<compile_context>
chip_gen: v7x
topology: tpu7x:2x2x1
jax: 0.10.0
libtpu: 0.0.40
codegen_flags: <defaults>
</compile_context>

<pallas_src>
import jax
import jax.numpy as jnp
from jax.experimental import pallas as pl
from jax.experimental.pallas import tpu as pltpu


def _round_up(x, m):
    return ((x + m - 1) // m) * m


def _pick_tile_b(bp, tile_b):
    """Largest multiple of 8 that divides bp, is <= tile_b, and (when bp allows)
    leaves at least 2 batch tiles so both v7x TensorCores get work."""
    best = 8
    d = 8
    while d <= min(tile_b, bp):
        if bp % d == 0 and (bp // d >= 2 or bp == 8):
            best = d
        d += 8
    return best


# --------------------------------------------------------------------------
# Resident-weight kernel: 1-D grid over batch tiles; weights live in VMEM for
# the whole grid (constant index_map + Buffered(1)).
# --------------------------------------------------------------------------
def _fused_kernel(mol_ref, prot_ref, wm_ref, bm_ref, wp_ref, bp_ref,
                  wfm_ref, wfp_ref, bfc_ref, out_ref):
    w_dtype = wm_ref.dtype

    mol_proj = jnp.dot(mol_ref[...].astype(w_dtype), wm_ref[...],
                       preferred_element_type=jnp.float32) + bm_ref[...]
    mol_proj = jnp.maximum(mol_proj, 0.0)

    prot_proj = jnp.dot(prot_ref[...].astype(w_dtype), wp_ref[...],
                        preferred_element_type=jnp.float32) + bp_ref[...]
    prot_proj = jnp.maximum(prot_proj, 0.0)

    # Split-fc head: contribution of both halves, reduced over the lane axis.
    z = jnp.sum(mol_proj * wfm_ref[...] + prot_proj * wfp_ref[...],
                axis=-1, keepdims=True) + bfc_ref[0]
    out_ref[...] = (1.0 / (1.0 + jnp.exp(-z))).astype(out_ref.dtype)


# --------------------------------------------------------------------------
# Fallback kernel: latent axis tiled (reduction, "arbitrary", last in grid)
# for configurations whose weights do not fit the VMEM budget.
# --------------------------------------------------------------------------
def _reduce_kernel(mol_ref, prot_ref, wm_ref, bm_ref, wp_ref, bp_ref,
                   wfm_ref, wfp_ref, bfc_ref, out_ref, acc_ref):
    l = pl.program_id(1)

    @pl.when(l == 0)
    def _init():
        acc_ref[...] = jnp.zeros_like(acc_ref)

    w_dtype = wm_ref.dtype
    mol_proj = jnp.maximum(
        jnp.dot(mol_ref[...].astype(w_dtype), wm_ref[...],
                preferred_element_type=jnp.float32) + bm_ref[...], 0.0)
    prot_proj = jnp.maximum(
        jnp.dot(prot_ref[...].astype(w_dtype), wp_ref[...],
                preferred_element_type=jnp.float32) + bp_ref[...], 0.0)

    acc_ref[...] += jnp.sum(mol_proj * wfm_ref[...] + prot_proj * wfp_ref[...],
                            axis=-1, keepdims=True)

    @pl.when(l == pl.num_programs(1) - 1)
    def _finalize():
        z = acc_ref[...] + bfc_ref[0]
        out_ref[...] = (1.0 / (1.0 + jnp.exp(-z))).astype(out_ref.dtype)


def separate_concat_forward(mol_emb, prot_emb, params, *,
                            tile_b=256, tile_l=512,
                            weight_dtype=jnp.bfloat16,
                            vmem_budget_bytes=36 * 1024 * 1024):
    """JAX/Pallas equivalent of SeparateConcat.forward.

    params = (wm, bm, wp, bp, wfc, bfc) in the x @ W + b convention:
      wm:(Dm,L) bm:(L,) wp:(Dp,L) bp:(L,) wfc:(2L,1) bfc: scalar
    """
    wm, bm, wp, bp, wfc, bfc = params
    B, Dm = mol_emb.shape
    Dp = prot_emb.shape[1]
    L = wm.shape[1]
    out_dtype = mol_emb.dtype

    # ---- one-time parameter prep -----------------------------------------
    # Pad protein K-dim to a 128-lane multiple (zero rows/cols contribute 0).
    Dp_pad = _round_up(Dp, 128)
    if Dp_pad != Dp:
        wp = jnp.pad(wp, ((0, Dp_pad - Dp), (0, 0)))
        prot_emb = jnp.pad(prot_emb, ((0, 0), (0, Dp_pad - Dp)))

    wm = wm.astype(weight_dtype)
    wp = wp.astype(weight_dtype)
    bm2 = bm.astype(jnp.float32).reshape(1, L)
    bp2 = bp.astype(jnp.float32).reshape(1, L)
    wfc_flat = wfc.reshape(2 * L).astype(jnp.float32)
    wfc_mol = wfc_flat[:L].reshape(1, L)
    wfc_prot = wfc_flat[L:].reshape(1, L)
    bfc_arr = jnp.asarray(bfc, jnp.float32).reshape(1)

    # ---- batch tiling: pad only to a multiple of 8, pick TB dividing Bp ---
    Bp = _round_up(B, 8)
    if Bp != B:
        mol_emb = jnp.pad(mol_emb, ((0, Bp - B), (0, 0)))
        prot_emb = jnp.pad(prot_emb, ((0, Bp - B), (0, 0)))
    TB = _pick_tile_b(Bp, tile_b)
    n_b = Bp // TB

    # ---- choose resident-weight fast path vs latent-tiled fallback --------
    w_item = jnp.dtype(weight_dtype).itemsize
    a_item = jnp.dtype(mol_emb.dtype).itemsize
    resident_bytes = (
        (Dm + Dp_pad) * L * w_item          # Wm, Wp (single-buffered)
        + 4 * L * 4                         # biases + fc halves (f32)
        + 2 * TB * (Dm + Dp_pad) * a_item   # double-buffered activation blocks
        + 2 * TB * L * 4                    # projection intermediates (f32)
        + 4 * TB * 4)                       # output blocks
    use_resident = resident_bytes <= vmem_budget_bytes

    if use_resident:
        def const_spec(shape):
            # Weight stays at block index (0, 0) for the whole grid -> one DMA;
            # Buffered(1) avoids allocating a second, never-used buffer.
            return pl.BlockSpec(shape, lambda i: (0, 0),
                                pipeline_mode=pl.Buffered(1))

        grid_spec = pltpu.PrefetchScalarGridSpec(
            num_scalar_prefetch=0,
            grid=(n_b,),
            in_specs=[
                pl.BlockSpec((TB, Dm), lambda i: (i, 0)),       # mol_emb
                pl.BlockSpec((TB, Dp_pad), lambda i: (i, 0)),   # prot_emb
                const_spec((Dm, L)),                            # Wm
                const_spec((1, L)),                             # bm
                const_spec((Dp_pad, L)),                        # Wp
                const_spec((1, L)),                             # bp
                const_spec((1, L)),                             # Wfc (mol half)
                const_spec((1, L)),                             # Wfc (prot half)
                pl.BlockSpec(memory_space=pltpu.SMEM),          # bfc scalar
            ],
            out_specs=pl.BlockSpec((TB, 1), lambda i: (i, 0)),
        )
        kernel = _fused_kernel
        dims = ("parallel",)
    else:
        TL = tile_l if (L % tile_l == 0) else L
        grid_spec = pltpu.PrefetchScalarGridSpec(
            num_scalar_prefetch=0,
            grid=(n_b, L // TL),
            in_specs=[
                pl.BlockSpec((TB, Dm), lambda i, l: (i, 0)),
                pl.BlockSpec((TB, Dp_pad), lambda i, l: (i, 0)),
                pl.BlockSpec((Dm, TL), lambda i, l: (0, l)),
                pl.BlockSpec((1, TL), lambda i, l: (0, l)),
                pl.BlockSpec((Dp_pad, TL), lambda i, l: (0, l)),
                pl.BlockSpec((1, TL), lambda i, l: (0, l)),
                pl.BlockSpec((1, TL), lambda i, l: (0, l)),
                pl.BlockSpec((1, TL), lambda i, l: (0, l)),
                pl.BlockSpec(memory_space=pltpu.SMEM),
            ],
            out_specs=pl.BlockSpec((TB, 1), lambda i, l: (i, 0)),
            scratch_shapes=[pltpu.VMEM((TB, 1), jnp.float32)],
        )
        kernel = _reduce_kernel
        dims = ("parallel", "arbitrary")

    out = pl.pallas_call(
        kernel,
        out_shape=jax.ShapeDtypeStruct((Bp, 1), out_dtype),
        grid_spec=grid_spec,
        compiler_params=pltpu.CompilerParams(
            dimension_semantics=dims,
            vmem_limit_bytes=40 * 1024 * 1024),
    )(mol_emb, prot_emb, wm, bm2, wp, bp2, wfc_mol, wfc_prot, bfc_arr)

    # torch .squeeze(): drop all size-1 dims of the (B, 1) result.
    return jnp.squeeze(out[:B])


def _reference(mol_emb, prot_emb, params):
    wm, bm, wp, bp, wfc, bfc = params
    mol_proj = jax.nn.relu(mol_emb @ wm + bm)
    prot_proj = jax.nn.relu(prot_emb @ wp + bp)
    cat = jnp.concatenate([mol_proj, prot_proj], axis=1)
    return jnp.squeeze(jax.nn.sigmoid(cat @ wfc.reshape(-1, 1) + bfc))


if __name__ == "__main__":
    key = jax.random.PRNGKey(0)
    ks = jax.random.split(key, 7)

    # Small shapes consistent with the module (defaults are 2048/100/1024).
    # B=18 exercises the batch-pad-to-8 + divisor-TB path.
    B, Dm, Dp, L = 18, 512, 100, 512

    mol_emb = jax.random.normal(ks[0], (B, Dm), jnp.float32)
    prot_emb = jax.random.normal(ks[1], (B, Dp), jnp.float32)

    wm = jax.random.normal(ks[2], (Dm, L), jnp.float32) / jnp.sqrt(Dm)
    bm = jax.random.normal(ks[3], (L,), jnp.float32) * 0.05
    wp = jax.random.normal(ks[4], (Dp, L), jnp.float32) / jnp.sqrt(Dp)
    bp = jax.random.normal(ks[5], (L,), jnp.float32) * 0.05
    wfc = jax.random.normal(ks[6], (2 * L, 1), jnp.float32) / jnp.sqrt(2 * L)
    bfc = jnp.float32(0.1)

    params = (wm, bm, wp, bp, wfc, bfc)
    ref = _reference(mol_emb, prot_emb, params)

    # 1) Full f32 path (exact check against the reference).
    out_f32 = separate_concat_forward(mol_emb, prot_emb, params,
                                      weight_dtype=jnp.float32)
    out_f32 = jax.block_until_ready(out_f32)
    assert out_f32.shape == ref.shape, (out_f32.shape, ref.shape)
    assert jnp.allclose(out_f32, ref, atol=2e-5, rtol=2e-5), \
        float(jnp.max(jnp.abs(out_f32 - ref)))

    # 2) Default bf16-MXU path (f32 bias/acc/sigmoid) — loose tolerance.
    out_bf16 = separate_concat_forward(mol_emb, prot_emb, params)
    out_bf16 = jax.block_until_ready(out_bf16)
    assert out_bf16.shape == ref.shape, (out_bf16.shape, ref.shape)
    assert jnp.allclose(out_bf16, ref, atol=2e-2, rtol=2e-2), \
        float(jnp.max(jnp.abs(out_bf16 - ref)))

    print("KERNEL_OK")
</pallas_src>

<mosaic_0001>
module attributes {stable_mosaic.version = 11 : i64} {
  func.func @_fused_kernel(%arg0: i32, %arg1: memref<8x512xf32, #tpu.memory_space<vmem>>, %arg2: memref<8x128xf32, #tpu.memory_space<vmem>>, %arg3: memref<512x512xf32, #tpu.memory_space<vmem>>, %arg4: memref<1x512xf32, #tpu.memory_space<vmem>>, %arg5: memref<128x512xf32, #tpu.memory_space<vmem>>, %arg6: memref<1x512xf32, #tpu.memory_space<vmem>>, %arg7: memref<1x512xf32, #tpu.memory_space<vmem>>, %arg8: memref<1x512xf32, #tpu.memory_space<vmem>>, %arg9: memref<1xf32, #tpu.memory_space<smem>>, %arg10: memref<8x1xf32, #tpu.memory_space<vmem>>) attributes {dimension_semantics = [#tpu.dimension_semantics<parallel>], iteration_bounds = array<i64: 3>, scalar_prefetch = 0 : i64, scratch_operands = 0 : i64, tpu.core_type = #tpu.core_type<tc>, window_params = [{transform_indices = @transform_0, window_bounds = array<i64: 8, 512>}, {transform_indices = @transform_1, window_bounds = array<i64: 8, 128>}, {pipeline_mode = #tpu.pipeline_mode<synchronous>, transform_indices = @transform_2, window_bounds = array<i64: 512, 512>}, {pipeline_mode = #tpu.pipeline_mode<synchronous>, transform_indices = @transform_3, window_bounds = array<i64: 1, 512>}, {pipeline_mode = #tpu.pipeline_mode<synchronous>, transform_indices = @transform_4, window_bounds = array<i64: 128, 512>}, {pipeline_mode = #tpu.pipeline_mode<synchronous>, transform_indices = @transform_5, window_bounds = array<i64: 1, 512>}, {pipeline_mode = #tpu.pipeline_mode<synchronous>, transform_indices = @transform_6, window_bounds = array<i64: 1, 512>}, {pipeline_mode = #tpu.pipeline_mode<synchronous>, transform_indices = @transform_7, window_bounds = array<i64: 1, 512>}, {transform_indices = @transform_8, window_bounds = array<i64: 1>}, {transform_indices = @transform_9, window_bounds = array<i64: 8, 1>}]} {
    %c0 = arith.constant 0 : index
    %c0_0 = arith.constant 0 : index
    %0 = vector.load %arg1[%c0, %c0_0] : memref<8x512xf32, #tpu.memory_space<vmem>>, vector<8x512xf32>
    %c0_1 = arith.constant 0 : index
    %c0_2 = arith.constant 0 : index
    %1 = vector.load %arg3[%c0_1, %c0_2] : memref<512x512xf32, #tpu.memory_space<vmem>>, vector<512x512xf32>
    %cst = arith.constant dense<0.000000e+00> : vector<8x512xf32>
    %2 = tpu.matmul %0, %1, %cst {dimension_numbers = #tpu.dot_dimension_numbers<[1], [0], [0], [1], [0, 0, 1, 1], [], []>} : vector<8x512xf32>, vector<512x512xf32>, vector<8x512xf32> -> vector<8x512xf32>
    %c0_3 = arith.constant 0 : index
    %c0_4 = arith.constant 0 : index
    %3 = vector.load %arg4[%c0_3, %c0_4] : memref<1x512xf32, #tpu.memory_space<vmem>>, vector<1x512xf32>
    %4 = vector.broadcast %3 : vector<1x512xf32> to vector<8x512xf32>
    %5 = arith.addf %2, %4 : vector<8x512xf32>
    %cst_5 = arith.constant 0.000000e+00 : f32
    %6 = vector.broadcast %cst_5 : f32 to vector<8x512xf32>
    %7 = arith.maximumf %5, %6 : vector<8x512xf32>
    %c0_6 = arith.constant 0 : index
    %c0_7 = arith.constant 0 : index
    %8 = vector.load %arg2[%c0_6, %c0_7] : memref<8x128xf32, #tpu.memory_space<vmem>>, vector<8x128xf32>
    %c0_8 = arith.constant 0 : index
    %c0_9 = arith.constant 0 : index
    %9 = vector.load %arg5[%c0_8, %c0_9] : memref<128x512xf32, #tpu.memory_space<vmem>>, vector<128x512xf32>
    %cst_10 = arith.constant dense<0.000000e+00> : vector<8x512xf32>
    %10 = tpu.matmul %8, %9, %cst_10 {dimension_numbers = #tpu.dot_dimension_numbers<[1], [0], [0], [1], [0, 0, 1, 1], [], []>} : vector<8x128xf32>, vector<128x512xf32>, vector<8x512xf32> -> vector<8x512xf32>
    %c0_11 = arith.constant 0 : index
    %c0_12 = arith.constant 0 : index
    %11 = vector.load %arg6[%c0_11, %c0_12] : memref<1x512xf32, #tpu.memory_space<vmem>>, vector<1x512xf32>
    %12 = vector.broadcast %11 : vector<1x512xf32> to vector<8x512xf32>
    %13 = arith.addf %10, %12 : vector<8x512xf32>
    %cst_13 = arith.constant 0.000000e+00 : f32
    %14 = vector.broadcast %cst_13 : f32 to vector<8x512xf32>
    %15 = arith.maximumf %13, %14 : vector<8x512xf32>
    %c0_14 = arith.constant 0 : index
    %c0_15 = arith.constant 0 : index
    %16 = vector.load %arg7[%c0_14, %c0_15] : memref<1x512xf32, #tpu.memory_space<vmem>>, vector<1x512xf32>
    %17 = vector.broadcast %16 : vector<1x512xf32> to vector<8x512xf32>
    %18 = arith.mulf %7, %17 : vector<8x512xf32>
    %c0_16 = arith.constant 0 : index
    %c0_17 = arith.constant 0 : index
    %19 = vector.load %arg8[%c0_16, %c0_17] : memref<1x512xf32, #tpu.memory_space<vmem>>, vector<1x512xf32>
    %20 = vector.broadcast %19 : vector<1x512xf32> to vector<8x512xf32>
    %21 = arith.mulf %15, %20 : vector<8x512xf32>
    %22 = arith.addf %18, %21 : vector<8x512xf32>
    %cst_18 = arith.constant dense<0.000000e+00> : vector<8xf32>
    %23 = vector.multi_reduction <add>, %22, %cst_18 [1] : vector<8x512xf32> to vector<8xf32>
    %24 = vector.shape_cast %23 : vector<8xf32> to vector<8x1xf32>
    %c0_19 = arith.constant 0 : index
    %25 = memref.load %arg9[%c0_19] : memref<1xf32, #tpu.memory_space<smem>>
    %26 = vector.broadcast %25 : f32 to vector<8x1xf32>
    %27 = arith.addf %24, %26 : vector<8x1xf32>
    %cst_20 = arith.constant 0.000000e+00 : f32
    %28 = vector.broadcast %cst_20 : f32 to vector<8x1xf32>
    %29 = arith.subf %28, %27 : vector<8x1xf32>
    %30 = math.exp %29 : vector<8x1xf32>
    %cst_21 = arith.constant 1.000000e+00 : f32
    %31 = vector.broadcast %cst_21 : f32 to vector<8x1xf32>
    %32 = arith.addf %31, %30 : vector<8x1xf32>
    %cst_22 = arith.constant 1.000000e+00 : f32
    %33 = vector.broadcast %cst_22 : f32 to vector<8x1xf32>
    %34 = arith.divf %33, %32 : vector<8x1xf32>
    %c0_23 = arith.constant 0 : index
    %c0_24 = arith.constant 0 : index
    %35 = vector.load %arg10[%c0_23, %c0_24] : memref<8x1xf32, #tpu.memory_space<vmem>>, vector<8x1xf32>
    tpu.vector_store %arg10[%c0_23, %c0_24], %34 {strides = array<i32>} : memref<8x1xf32, #tpu.memory_space<vmem>>, vector<8x1xf32>,
    return
  }
  func.func @transform_0(%arg0: i32) -> (i32, i32) {
    %c0_i32 = arith.constant 0 : i32
    %c0_i32_0 = arith.constant 0 : i32
    return %arg0, %c0_i32 : i32, i32
  }
  func.func @transform_1(%arg0: i32) -> (i32, i32) {
    %c0_i32 = arith.constant 0 : i32
    %c0_i32_0 = arith.constant 0 : i32
    return %arg0, %c0_i32 : i32, i32
  }
  func.func @transform_2(%arg0: i32) -> (i32, i32) {
    %c0_i32 = arith.constant 0 : i32
    %c0_i32_0 = arith.constant 0 : i32
    %c0_i32_1 = arith.constant 0 : i32
    return %c0_i32, %c0_i32_0 : i32, i32
  }
  func.func @transform_3(%arg0: i32) -> (i32, i32) {
    %c0_i32 = arith.constant 0 : i32
    %c0_i32_0 = arith.constant 0 : i32
    %c0_i32_1 = arith.constant 0 : i32
    return %c0_i32, %c0_i32_0 : i32, i32
  }
  func.func @transform_4(%arg0: i32) -> (i32, i32) {
    %c0_i32 = arith.constant 0 : i32
    %c0_i32_0 = arith.constant 0 : i32
    %c0_i32_1 = arith.constant 0 : i32
    return %c0_i32, %c0_i32_0 : i32, i32
  }
  func.func @transform_5(%arg0: i32) -> (i32, i32) {
    %c0_i32 = arith.constant 0 : i32
    %c0_i32_0 = arith.constant 0 : i32
    %c0_i32_1 = arith.constant 0 : i32
    return %c0_i32, %c0_i32_0 : i32, i32
  }
  func.func @transform_6(%arg0: i32) -> (i32, i32) {
    %c0_i32 = arith.constant 0 : i32
    %c0_i32_0 = arith.constant 0 : i32
    %c0_i32_1 = arith.constant 0 : i32
    return %c0_i32, %c0_i32_0 : i32, i32
  }
  func.func @transform_7(%arg0: i32) -> (i32, i32) {
    %c0_i32 = arith.constant 0 : i32
    %c0_i32_0 = arith.constant 0 : i32
    %c0_i32_1 = arith.constant 0 : i32
    return %c0_i32, %c0_i32_0 : i32, i32
  }
  func.func @transform_8(%arg0: i32) -> i32 {
    %c0_i32 = arith.constant 0 : i32
    %c0_i32_0 = arith.constant 0 : i32
    return %c0_i32 : i32
  }
  func.func @transform_9(%arg0: i32) -> (i32, i32) {
    %c0_i32 = arith.constant 0 : i32
    %c0_i32_0 = arith.constant 0 : i32
    return %arg0, %c0_i32 : i32, i32
  }
}

</mosaic_0001>

<bundles_post_ra>
// kernel: tpu_custom_call.1
= control target key start
LH: loop header
LB: loop body
LE: loop exit
PB: predicated region body
PF: predicated region fallthrough
CT: control target
= control target key end

     0   :  { %s2276_s0 = inlined_call_operand.hbm [shape: f32[24,512], index: 0, kind: input, shape index: {}]   ;;  %s2277_s1 = inlined_call_operand.hbm [shape: f32[24,128], index: 1, kind: input, shape index: {}]   ;;  %s2278_s2 = inlined_call_operand.hbm [shape: f32[512,512], index: 2, kind: input, shape index: {}]   ;;  %s2279_s3 = inlined_call_operand.vmem [shape: f32[1,512], index: 3, kind: input, shape index: {}]   ;;  %s2280_s4 = inlined_call_operand.hbm [shape: f32[128,512], index: 4, kind: input, shape index: {}]   ;;  %s2281_s5 = inlined_call_operand.vmem [shape: f32[1,512], index: 5, kind: input, shape index: {}]   ;;  %s2282_s6 = inlined_call_operand.vmem [shape: f32[1,512], index: 6, kind: input, shape index: {}]   ;;  %s2283_s7 = inlined_call_operand.vmem [shape: f32[1,512], index: 7, kind: input, shape index: {}]   ;;  %s2284_s8 = inlined_call_operand.<no memory space> [shape: f32[1], index: 8, kind: input, shape index: {}]   ;;  %s2285_s9 = inlined_call_operand.vmem [shape: f32[24,1], index: 9, kind: output, shape index: {}]  }
   0x1   :  { %2289 = sst [smem:[#allocation14_spill]] %s2276_s0 }
   0x2   :  { %14 = sst [smem:[#allocation2]] %s2284_s8 }
   0x3   :  { %15 = vsyncpa [#allocation4], 0 }
   0x4   :  { %17 = vsyncpa [#allocation4 + $0x1], 0 }
   0x5   :  { %18 = vsyncpa [#allocation6], 0 }
   0x6   :  { %20 = vsyncpa [#allocation6 + $0x1], 0 }
   0x7   :  { %21 = vsyncpa [#allocation9], 0  ;;  %s2041_s11 = smov 0   ;;  %s2043_s12 = smov 0  }
   0x8   :  { %s2045_s13 = smov 0   ;;  %s2047_s14 = smov 0  }
   0x9 LB: > { %s2060_s8 = sadd.s32 4294967295, %s1979_s14   ;;  %p47_p0 = scmp.ne.s32.totalorder %s1971_s12, %s1967_s11  ;;  %s1979_s14 = sphi %s2047_s14, %s2305_s14   ;;  %s1975_s13 = sphi %s2045_s13, %s2304_s13   ;;  %s1971_s12 = sphi %s2043_s12, %s2303_s12   ;;  %s1967_s11 = sphi %s2041_s11, %s2302_s11  }
   0xa   : > { %p2286_p1 = scmp.eq.s32.totalorder %s2060_s8, 0  ;;  %p1399_p2 = scmp.ge.s32.totalorder %s1979_s14, 1 }
   0xb   : > { %p257_p3 = scmp.lt.s32.totalorder %s1979_s14, 4  ;;  %s1981_s17 = smov [#allocation7]  }
   0xc   : > { %p2068_p4 = por %p2286_p1, %p47_p0  ;;  %s269_s18 = sshll.u32 %s1981_s17, 4  ;;  %s270_s18 = int_to_ptr.vmem [resolvable:$true] %s269_s18 }
   0xd   : > { %p2072_p5 = pnand %p1399_p2, %p257_p3  ;;  %s1982_s20 = smov [#allocation8]  }
   0xe   : > { %s2290_s15 = scalar_select %p2068_p4, 1, 0 }
   0xf   : > { %s2291_s16 = scalar_select %p2072_p5, 1, 0 }
  0x10   : > { %p1757_p6 = pneg %p2072_p5  ;;  %s285_s21 = sshll.u32 %s1982_s20, 4  ;;  %s2084_s21 = int_to_ptr.vmem [resolvable:$true] %s285_s21 }
  0x11   : > { %s1817_s24 = scalar_lea.hbm %s2278_s2, 32768 }
  0x12   : > { %p2080_p7 = pnand %p1757_p6, %p2286_p1  ;;  %p1818_p8 = scmp.ne.s32.totalorder %s2278_s2, %s1817_s24 }
  0x13   : > { %p1824_p12 = scmp.lt.u32.totalorder %s1817_s24, %s2278_s2 }
  0x14   : > { %p1819_p9 = pneg %p2080_p7 }
  0x16   : > { %p1820_p10 = pnand %p1819_p9, %p1818_p8 }
  0x18   : > { %p1821_p11 = pneg %p1820_p10 }
  0x1a   : > { %p1826_p13 = pnand %p1824_p12, %p1821_p11 }
  0x1c   : > { %1829 = shalt.err (!%p1826_p13)
}
  0x1d   : > { %s1830_s29 = scalar_lea.vmem %s270_s18, 32768  ;;  %p1838_p6 = scmp.lt.s32.totalorder %s270_s18, %s270_s18 }
  0x1e   : > { %p1831_p0 = scmp.ne.s32.totalorder %s270_s18, %s1830_s29  ;;  %p1839_p1 = scmp.lt.s32.totalorder %s1830_s29, %s1830_s29 }
  0x20   : > { %p1833_p2 = pnand %p1831_p0, %p1819_p9  ;;  %p1840_p4 = por %p1839_p1, %p1838_p6 }
  0x22   : > { %p1834_p3 = pneg %p1833_p2 }
  0x24   : > { %p1841_p5 = pnand %p1840_p4, %p1834_p3 }
  0x26   : > { %1844 = shalt.err (!%p1841_p5)
}
  0x27   : > { %s1983_s30 = smov 512   ;;  %s1984_s10 = smov 32  }
  0x28   : > { %1760 = dma.hbm_to_vmem [thread:$0]  (!%p2080_p7), %s2278_s2, 32768, %s270_s18, [#allocation6], %s1983_s30, %s1983_s30, %s1984_s10  }
  0x29   : > { %s1845_s23 = scalar_lea.hbm %s2280_s4, 8192 }
  0x2a   : > { %p1846_p8 = scmp.ne.s32.totalorder %s2280_s4, %s1845_s23  ;;  %p1852_p5 = scmp.lt.u32.totalorder %s1845_s23, %s2280_s4 }
  0x2c   : > { %p1848_p1 = pnand %p1846_p8, %p1819_p9 }
  0x2e   : > { %p1849_p4 = pneg %p1848_p1 }
  0x30   : > { %p1854_p10 = pnand %p1852_p5, %p1849_p4 }
  0x32   : > { %1857 = shalt.err (!%p1854_p10)
}
  0x33   : > { %s1858_s18 = scalar_lea.vmem %s2084_s21, 8192  ;;  %p1866_p0 = scmp.lt.s32.totalorder %s2084_s21, %s2084_s21 }
  0x34   : > { %p1859_p11 = scmp.ne.s32.totalorder %s2084_s21, %s1858_s18  ;;  %p1867_p2 = scmp.lt.s32.totalorder %s1858_s18, %s1858_s18 }
  0x36   : > { %p1861_p12 = pnand %p1859_p11, %p1819_p9  ;;  %p1868_p3 = por %p1867_p2, %p1866_p0 }
  0x38   : > { %p1862_p13 = pneg %p1861_p12 }
  0x3a   : > { %p1869_p6 = pnand %p1868_p3, %p1862_p13 }
  0x3c   : > { %1872 = shalt.err (!%p1869_p6)
}
  0x3d   : > { %1763 = dma.hbm_to_vmem [thread:$0]  (!%p2080_p7), %s2280_s4, 8192, %s2084_s21, [#allocation9], %s1983_s30, %s1983_s30, %s1984_s10  }
  0x3e   : > { %s2134_s11 = sadd.s32 1, %s1979_s14   ;;  %s34_s17 = sadd.s32 1, %s1975_s13 }
  0x3f   : > { %s31_s19 = ssub.s32 %s1979_s14, %s2134_s11  ;;  %p41_p9 = scmp.ne.s32.totalorder %s1975_s13, %s1971_s12 }
  0x40   : > { %p32_p8 = scmp.eq.s32.totalorder %s31_s19, 0  ;;  %p42_p1 = scmp.eq.s32.totalorder %s1979_s14, 0 }
  0x41   : > { %p1773_p4 = scmp.lt.s32.totalorder %s1979_s14, 3  ;;  %s2144_s20 = sand.u32 1, %s1975_s13  }
  0x42   : > { %s2147_s22 = scalar_select %p32_p8, %s1975_s13, %s34_s17  }
  0x43   : > { %p43_p5 = por %p42_p1, %p41_p9  ;;  %s1403_s23 = sshll.u32 %s2144_s20, 5 }
  0x44   : > { %s1416_s24 = sshll.u32 %s1979_s14, 9  ;;  %s2293_s0 = sld [smem:[#allocation14_spill]] }
  0x45   : > { %s315_s25 = scalar_lea.vmem [#allocation3], %s1403_s23  ;;  %p2156_p7 = pnand %p1773_p4, %p43_p5 }
  0x46   : > { %s323_s26 = sshll.u32 %s315_s25, 4  ;;  %s330_s18 = sand.u32 1, %s1979_s14   ;;  %s2160_s26 = int_to_ptr.vmem [resolvable:$true] %s323_s26 }
  0x47   : > { %s312_s28 = scalar_lea.sflag [#allocation4], %s2144_s20  ;;  %p1875_p11 = pneg %p2156_p7 }
  0x4a   : > { %s2154_s10 = scalar_lea.hbm %s2293_s0, %s1416_s24  ;;  %s1878_s23 = scalar_lea.hbm %s2293_s0, 1536 }
  0x4b   : > { %s1873_s29 = scalar_lea.hbm %s2154_s10, 512  ;;  %p1879_p0 = scmp.lt.u32.totalorder %s2154_s10, %s2293_s0 }
  0x4c   : > { %p1874_p10 = scmp.ne.s32.totalorder %s2154_s10, %s1873_s29  ;;  %p1880_p2 = scmp.lt.u32.totalorder %s1878_s23, %s1873_s29 }
  0x4d   : > { %p1882_p6 = scmp.lt.u32.totalorder %s1873_s29, %s2154_s10 }
  0x4e   : > { %p1876_p12 = pnand %p1875_p11, %p1874_p10  ;;  %p1881_p3 = por %p1880_p2, %p1879_p0 }
  0x50   : > { %p1877_p13 = pneg %p1876_p12  ;;  %p1883_p9 = por %p1882_p6, %p1881_p3 }
  0x52   : > { %p1884_p8 = pnand %p1883_p9, %p1877_p13 }
  0x54   : > { %1887 = shalt.err (!%p1884_p8)
}
  0x55   : > { %s1888_s30 = scalar_lea.vmem %s2160_s26, 512  ;;  %s1985_s25 = smov [#allocation3]  }
  0x56   : > { %p1889_p1 = scmp.ne.s32.totalorder %s2160_s26, %s1888_s30  ;;  %s1893_s17 = sshll.u32 %s1985_s25, 4  ;;  %s1894_s17 = int_to_ptr.vmem [resolvable:$false] %s1893_s17 }
  0x57   : > { %s1895_s19 = scalar_lea.vmem %s1894_s17, 1024  ;;  %p1896_p10 = scmp.lt.s32.totalorder %s2160_s26, %s1894_s17 }
  0x58   : > { %p1891_p4 = pnand %p1889_p1, %p1875_p11  ;;  %p1897_p12 = scmp.lt.s32.totalorder %s1895_s19, %s1888_s30 }
  0x5a   : > { %p1892_p5 = pneg %p1891_p4  ;;  %p1898_p0 = por %p1897_p12, %p1896_p10 }
  0x5c   : > { %p1899_p2 = pnand %p1898_p0, %p1892_p5 }
  0x5e   : > { %1902 = shalt.err (!%p1899_p2)
}
  0x5f   : > { %1767 = dma.hbm_to_vmem [thread:$0]  (!%p2156_p7), %s2154_s10, 512, %s2160_s26, %s312_s28  }
  0x60   : > { %s1406_s29 = sshll.u32 %s2144_s20, 3  ;;  %s1407_s23 = sshll.u32 %s1979_s14, 7 }
  0x61   : > { %s2194_s25 = scalar_lea.hbm %s2277_s1, %s1407_s23  ;;  %s334_s30 = scalar_lea.vmem [#allocation5], %s1406_s29 }
  0x62   : > { %s341_s17 = sshll.u32 %s334_s30, 4  ;;  %s331_s19 = scalar_lea.sflag [#allocation6], %s330_s18  ;;  %s342_s17 = int_to_ptr.vmem [resolvable:$true] %s341_s17 }
  0x63   : > { %s1903_s0 = scalar_lea.hbm %s2194_s25, 128  ;;  %s1908_s26 = scalar_lea.hbm %s2277_s1, 384 }
  0x64   : > { %p1904_p13 = scmp.ne.s32.totalorder %s2194_s25, %s1903_s0  ;;  %p1909_p9 = scmp.lt.u32.totalorder %s2194_s25, %s2277_s1 }
  0x65   : > { %p1910_p8 = scmp.lt.u32.totalorder %s1908_s26, %s1903_s0  ;;  %p1912_p4 = scmp.lt.u32.totalorder %s1903_s0, %s2194_s25 }
  0x66   : > { %p1906_p3 = pnand %p1904_p13, %p1875_p11 }
  0x67   : > { %p1911_p1 = por %p1910_p8, %p1909_p9 }
  0x68   : > { %p1907_p6 = pneg %p1906_p3 }
  0x69   : > { %p1913_p5 = por %p1912_p4, %p1911_p1 }
  0x6b   : > { %p1914_p10 = pnand %p1913_p5, %p1907_p6 }
  0x6d   : > { %1917 = shalt.err (!%p1914_p10)
}
  0x6e   : > { %s1918_s14 = scalar_lea.vmem %s342_s17, 128  ;;  %s1986_s18 = smov [#allocation5]  }
  0x6f   : > { %p1919_p12 = scmp.ne.s32.totalorder %s342_s17, %s1918_s14  ;;  %s1923_s29 = sshll.u32 %s1986_s18, 4  ;;  %s1924_s29 = int_to_ptr.vmem [resolvable:$false] %s1923_s29 }
  0x70   : > { %s1925_s24 = scalar_lea.vmem %s1924_s29, 256  ;;  %p1926_p13 = scmp.lt.s32.totalorder %s342_s17, %s1924_s29 }
  0x71   : > { %p1921_p0 = pnand %p1919_p12, %p1875_p11  ;;  %p1927_p3 = scmp.lt.s32.totalorder %s1925_s24, %s1918_s14 }
  0x73   : > { %p1922_p2 = pneg %p1921_p0  ;;  %p1928_p8 = por %p1927_p3, %p1926_p13 }
  0x75   : > { %p1929_p9 = pnand %p1928_p8, %p1922_p2 }
  0x77   : > { %1932 = shalt.err (!%p1929_p9)
}
  0x78   : > { %1770 = dma.hbm_to_vmem [thread:$0]  (!%p2156_p7), %s2194_s25, 128, %s342_s17, %s331_s19  }
  0x79   : > { %p2295_p6 = scmp.ne.s32.totalorder %s2291_s16, 0 }
  0x7a   : > { %s352_s0 = sand.u32 (!%p2295_p6), 1, %s1971_s12   ;;  %p2296_p11 = scmp.ne.s32.totalorder (!%p2295_p6), %s2290_s15, 0 }
  0x7b   : > { %350 = sbr.rel (%p2295_p6) target bundleno = 705 (0x2c1), region = 56  ;;  %s1409_s21 = sshll.u32 (!%p2295_p6), %s352_s0, 5 }
  0x7c   : > { %s353_s30 = scalar_lea.sflag (!%p2295_p6), [#allocation4], %s352_s0  ;;  %s2220_s20 = scalar_lea.vmem (!%p2295_p6), [#allocation3], %s1409_s21 }
  0x82   : > { %1950 = dma.done.wait (%p2296_p11), %s353_s30, 512  }
  0x83   : > { %1952 = vsyncadd (%p2296_p11), %s353_s30, 4294966784  ;;  %s361_s27 = sand.u32 1, %s2060_s8   ;;  %s1410_s10 = sshll.u32 %s352_s0, 3 }
  0x84   : > { %s362_s25 = scalar_lea.sflag [#allocation6], %s361_s27  ;;  %s2227_s17 = scalar_lea.vmem [#allocation5], %s1410_s10 }
  0x85   : > { %1954 = dma.done.wait (%p2296_p11), %s362_s25, 128  }
  0x86   : > { %1956 = vsyncadd (%p2296_p11), %s362_s25, 4294967168  ;;  %p2297_p7 = scmp.eq.s32.totalorder %s2060_s8, 0 }
  0x88   : > { %1958 = dma.done.wait (%p2297_p7), [#allocation6], 32768   ;;  %p2298_p1 = pmov %p2297_p7 }
  0x8a   : > { %1960 = vsyncadd (%p2298_p1), [#allocation6], 4294934528  ;;  %p2299_p4 = pmov %p2298_p1 }
  0x8b   : > { %p2300_p5 = pmov %p2298_p1 }
  0x8c   : > { %1962 = dma.done.wait (%p2299_p4), [#allocation9], 8192  }
  0x8d   : > { %1964 = vsyncadd (%p2300_p5), [#allocation9], 4294959104  ;;  %v421_v0 = vld [vmem:[#allocation7 + $0x8] sm:$0xff]  ;;  %v423_v2 = vld [vmem:[#allocation7 + $0x18] sm:$0xff]  ;;  %s1280_s29 = sld [smem:[#allocation2]]  ;;  %p412_p10 = scmp.lt.s32.totalorder %s2060_s8, 2 }
  0x8e   : > { %v425_v1 = vld [vmem:[#allocation7 + $0x28] sm:$0xff]  ;;  %v427_v4 = vld [vmem:[#allocation7 + $0x38] sm:$0xff]  ;;  %v420_v5 = vld [vmem:[#allocation7] sm:$0xff]  ;;  %vm1289_vm0 = vcmask 7168  }
  0x8f   : > { %v1417_v3 = vpack.c.bf16 %v425_v1, %v421_v0  ;;  %v424_v6 = vld [vmem:[#allocation7 + $0x20] sm:$0xff]  ;;  %v1545_v7 = vpack.c.bf16 %v427_v4, %v423_v2  ;;  %v422_v9 = vld [vmem:[#allocation7 + $0x10] sm:$0xff]  ;;  %v429_v11 = vld [vmem:[#allocation7 + $0x48] sm:$0xff]  ;;  %s2307_s8 = smov (!%p412_p10, %s2060_s8), 2 }
  0x90   : > { %v1419_v8 = vpack.c.bf16 %v424_v6, %v420_v5  ;;  %v426_v10 = vld [vmem:[#allocation7 + $0x30] sm:$0xff]  ;;  %v433_v13 = vld [vmem:[#allocation7 + $0x68] sm:$0xff]  ;;  %v431_v14 = vld [vmem:[#allocation7 + $0x58] sm:$0xff]  ;;  %s1413_s24 = sshll.u32 %s2307_s8, 3 }
  0x91   : > { %1418 = vmatprep.subr.bf16.mxu0 %v1417_v3  ;;  %v1547_v12 = vpack.c.bf16 %v426_v10, %v422_v9  ;;  %v435_v15 = vld [vmem:[#allocation7 + $0x78] sm:$0xff]  ;;  %1546 = vmatprep.subr.bf16.mxu1 %v1545_v7  ;;  %v1421_v16 = vpack.c.bf16 %v433_v13, %v429_v11  ;;  %v428_v18 = vld [vmem:[#allocation7 + $0x40] sm:$0xff]  ;;  %v430_v20 = vld [vmem:[#allocation7 + $0x50] sm:$0xff]  ;;  %s415_s30 = scalar_lea.vmem %s2285_s9, %s1413_s24 }
  0x92   : > { %1420 = vmatpush1.bf16.msra.mxu0 %v1419_v8  ;;  %v1549_v17 = vpack.c.bf16 %v435_v15, %v431_v14  ;;  %v432_v19 = vld [vmem:[#allocation7 + $0x60] sm:$0xff]  ;;  %v434_v22 = vld [vmem:[#allocation7 + $0x70] sm:$0xff]  ;;  %v437_v23 = vld [vmem:[#allocation7 + $0x88] sm:$0xff] }
  0x93   : > { %1548 = vmatpush1.bf16.msra.mxu1 %v1547_v12  ;;  %v1423_v21 = vpack.c.bf16 %v432_v19, %v428_v18  ;;  %v441_v24 = vld [vmem:[#allocation7 + $0xa8] sm:$0xff]  ;;  %1422 = vmatprep.subr.bf16.mxu0 %v1421_v16  ;;  %v1551_v25 = vpack.c.bf16 %v434_v22, %v430_v20  ;;  %v439_v27 = vld [vmem:[#allocation7 + $0x98] sm:$0xff]  ;;  %v436_v29 = vld [vmem:[#allocation7 + $0x80] sm:$0xff] }
  0x94   : > { %1550 = vmatprep.subr.bf16.mxu1 %v1549_v17  ;;  %v1425_v26 = vpack.c.bf16 %v441_v24, %v437_v23  ;;  %v443_v28 = vld [vmem:[#allocation7 + $0xb8] sm:$0xff]  ;;  %v440_v31 = vld [vmem:[#allocation7 + $0xa0] sm:$0xff]  ;;  %v438_v32 = vld [vmem:[#allocation7 + $0x90] sm:$0xff] }
  0x95   : > { %v1553_v30 = vpack.c.bf16 %v443_v28, %v439_v27  ;;  %v442_v33 = vld [vmem:[#allocation7 + $0xb0] sm:$0xff]  ;;  %v1427_v34 = vpack.c.bf16 %v440_v31, %v436_v29  ;;  %v445_v35 = vld [vmem:[#allocation7 + $0xc8] sm:$0xff]  ;;  %v447_v37 = vld [vmem:[#allocation7 + $0xd8] sm:$0xff] }
  0x96   : > { %1424 = vmatpush1.bf16.msra.mxu0 %v1423_v21  ;;  %v449_v36 = vld [vmem:[#allocation7 + $0xe8] sm:$0xff]  ;;  %v1555_v38 = vpack.c.bf16 %v442_v33, %v438_v32  ;;  %v451_v40 = vld [vmem:[#allocation7 + $0xf8] sm:$0xff]  ;;  %v444_v41 = vld [vmem:[#allocation7 + $0xc0] sm:$0xff] }
  0x97   : > { %1552 = vmatpush1.bf16.msra.mxu1 %v1551_v25  ;;  %1426 = vmatprep.subr.bf16.mxu0 %v1425_v26  ;;  %v1429_v39 = vpack.c.bf16 %v449_v36, %v445_v35  ;;  %v448_v42 = vld [vmem:[#allocation7 + $0xe0] sm:$0xff]  ;;  %v1557_v43 = vpack.c.bf16 %v451_v40, %v447_v37  ;;  %v446_v44 = vld [vmem:[#allocation7 + $0xd0] sm:$0xff]  ;;  %v453_v46 = vld [vmem:[#allocation7 + $0x108] sm:$0xff] }
  0x98   : > { %1554 = vmatprep.subr.bf16.mxu1 %v1553_v30  ;;  %v450_v45 = vld [vmem:[#allocation7 + $0xf0] sm:$0xff]  ;;  %v457_v47 = vld [vmem:[#allocation7 + $0x128] sm:$0xff]  ;;  %v455_v48 = vld [vmem:[#allocation7 + $0x118] sm:$0xff]  ;;  %v1431_v50 = vpack.c.bf16 %v448_v42, %v444_v41 }
  0x99   : > { %v459_v49 = vld [vmem:[#allocation7 + $0x138] sm:$0xff]  ;;  %v1559_v51 = vpack.c.bf16 %v450_v45, %v446_v44  ;;  %v1433_v52 = vpack.c.bf16 %v457_v47, %v453_v46  ;;  %v452_v53 = vld [vmem:[#allocation7 + $0x100] sm:$0xff]  ;;  %v454_v55 = vld [vmem:[#allocation7 + $0x110] sm:$0xff] }
  0x9a   : > { %1428 = vmatpush1.bf16.msra.mxu0 %v1427_v34  ;;  %v456_v54 = vld [vmem:[#allocation7 + $0x120] sm:$0xff]  ;;  %v1561_v56 = vpack.c.bf16 %v459_v49, %v455_v48  ;;  %v458_v57 = vld [vmem:[#allocation7 + $0x130] sm:$0xff]  ;;  %v461_v58 = vld [vmem:[#allocation7 + $0x148] sm:$0xff] }
  0x9b   : > { %1556 = vmatpush1.bf16.msra.mxu1 %v1555_v38  ;;  %1430 = vmatprep.subr.bf16.mxu0 %v1429_v39  ;;  %v465_v59 = vld [vmem:[#allocation7 + $0x168] sm:$0xff]  ;;  %v463_v60 = vld [vmem:[#allocation7 + $0x158] sm:$0xff]  ;;  %v1435_v62 = vpack.c.bf16 %v456_v54, %v452_v53  ;;  %v1563_v63 = vpack.c.bf16 %v458_v57, %v454_v55  ;;  %v460_v1 = vld [vmem:[#allocation7 + $0x140] sm:$0xff] }
  0x9c   : > { %1558 = vmatprep.subr.bf16.mxu1 %v1557_v43  ;;  %v467_v61 = vld [vmem:[#allocation7 + $0x178] sm:$0xff]  ;;  %v1437_v0 = vpack.c.bf16 %v465_v59, %v461_v58  ;;  %v464_v2 = vld [vmem:[#allocation7 + $0x160] sm:$0xff]  ;;  %v462_v3 = vld [vmem:[#allocation7 + $0x150] sm:$0xff] }
  0x9d   : > { %v1565_v4 = vpack.c.bf16 %v467_v61, %v463_v60  ;;  %v466_v5 = vld [vmem:[#allocation7 + $0x170] sm:$0xff]  ;;  %v469_v6 = vld [vmem:[#allocation7 + $0x188] sm:$0xff]  ;;  %v471_v8 = vld [vmem:[#allocation7 + $0x198] sm:$0xff]  ;;  %v1439_v10 = vpack.c.bf16 %v464_v2, %v460_v1 }
  0x9e   : > { %1432 = vmatpush1.bf16.msra.mxu0 %v1431_v50  ;;  %v473_v7 = vld [vmem:[#allocation7 + $0x1a8] sm:$0xff]  ;;  %v475_v9 = vld [vmem:[#allocation7 + $0x1b8] sm:$0xff]  ;;  %v1567_v11 = vpack.c.bf16 %v466_v5, %v462_v3  ;;  %v468_v13 = vld [vmem:[#allocation7 + $0x180] sm:$0xff] }
  0x9f   : > { %1560 = vmatpush1.bf16.msra.mxu1 %v1559_v51  ;;  %1434 = vmatprep.subr.bf16.mxu0 %v1433_v52  ;;  %v1441_v12 = vpack.c.bf16 %v473_v7, %v469_v6  ;;  %v472_v14 = vld [vmem:[#allocation7 + $0x1a0] sm:$0xff]  ;;  %v470_v15 = vld [vmem:[#allocation7 + $0x190] sm:$0xff]  ;;  %v1569_v16 = vpack.c.bf16 %v475_v9, %v471_v8  ;;  %v477_v18 = vld [vmem:[#allocation7 + $0x1c8] sm:$0xff] }
  0xa0   : > { %1562 = vmatprep.subr.bf16.mxu1 %v1561_v56  ;;  %v474_v17 = vld [vmem:[#allocation7 + $0x1b0] sm:$0xff]  ;;  %v481_v19 = vld [vmem:[#allocation7 + $0x1e8] sm:$0xff]  ;;  %v479_v20 = vld [vmem:[#allocation7 + $0x1d8] sm:$0xff]  ;;  %v1443_v22 = vpack.c.bf16 %v472_v14, %v468_v13 }
  0xa1   : > { %v483_v21 = vld [vmem:[#allocation7 + $0x1f8] sm:$0xff]  ;;  %v1571_v23 = vpack.c.bf16 %v474_v17, %v470_v15  ;;  %v1445_v24 = vpack.c.bf16 %v481_v19, %v477_v18  ;;  %v476_v25 = vld [vmem:[#allocation7 + $0x1c0] sm:$0xff]  ;;  %v478_v27 = vld [vmem:[#allocation7 + $0x1d0] sm:$0xff] }
  0xa2   : > { %1436 = vmatpush1.bf16.msra.mxu0 %v1435_v62  ;;  %v480_v26 = vld [vmem:[#allocation7 + $0x1e0] sm:$0xff]  ;;  %v1573_v28 = vpack.c.bf16 %v483_v21, %v479_v20  ;;  %v482_v29 = vld [vmem:[#allocation7 + $0x1f0] sm:$0xff]  ;;  %v485_v30 = vld [vmem:[#allocation7 + $0x208] sm:$0xff] }
  0xa3   : > { %1564 = vmatpush1.bf16.msra.mxu1 %v1563_v63  ;;  %1438 = vmatprep.subr.bf16.mxu0 %v1437_v0  ;;  %v489_v31 = vld [vmem:[#allocation7 + $0x228] sm:$0xff]  ;;  %v487_v32 = vld [vmem:[#allocation7 + $0x218] sm:$0xff]  ;;  %v1447_v34 = vpack.c.bf16 %v480_v26, %v476_v25  ;;  %v1575_v35 = vpack.c.bf16 %v482_v29, %v478_v27  ;;  %v484_v37 = vld [vmem:[#allocation7 + $0x200] sm:$0xff] }
  0xa4   : > { %1566 = vmatprep.subr.bf16.mxu1 %v1565_v4  ;;  %v491_v33 = vld [vmem:[#allocation7 + $0x238] sm:$0xff]  ;;  %v1449_v36 = vpack.c.bf16 %v489_v31, %v485_v30  ;;  %v488_v38 = vld [vmem:[#allocation7 + $0x220] sm:$0xff]  ;;  %v486_v39 = vld [vmem:[#allocation7 + $0x210] sm:$0xff] }
  0xa5   : > { %v1577_v40 = vpack.c.bf16 %v491_v33, %v487_v32  ;;  %v490_v41 = vld [vmem:[#allocation7 + $0x230] sm:$0xff]  ;;  %v493_v42 = vld [vmem:[#allocation7 + $0x248] sm:$0xff]  ;;  %v495_v44 = vld [vmem:[#allocation7 + $0x258] sm:$0xff]  ;;  %v1451_v46 = vpack.c.bf16 %v488_v38, %v484_v37 }
  0xa6   : > { %1440 = vmatpush1.bf16.msra.mxu0 %v1439_v10  ;;  %v497_v43 = vld [vmem:[#allocation7 + $0x268] sm:$0xff]  ;;  %v499_v45 = vld [vmem:[#allocation7 + $0x278] sm:$0xff]  ;;  %v1579_v47 = vpack.c.bf16 %v490_v41, %v486_v39  ;;  %v492_v49 = vld [vmem:[#allocation7 + $0x240] sm:$0xff] }
  0xa7   : > { %1568 = vmatpush1.bf16.msra.mxu1 %v1567_v11  ;;  %1442 = vmatprep.subr.bf16.mxu0 %v1441_v12  ;;  %v1453_v48 = vpack.c.bf16 %v497_v43, %v493_v42  ;;  %v496_v50 = vld [vmem:[#allocation7 + $0x260] sm:$0xff]  ;;  %v494_v51 = vld [vmem:[#allocation7 + $0x250] sm:$0xff]  ;;  %v1581_v52 = vpack.c.bf16 %v499_v45, %v495_v44  ;;  %v501_v54 = vld [vmem:[#allocation7 + $0x288] sm:$0xff] }
  0xa8   : > { %1570 = vmatprep.subr.bf16.mxu1 %v1569_v16  ;;  %v498_v53 = vld [vmem:[#allocation7 + $0x270] sm:$0xff]  ;;  %v505_v55 = vld [vmem:[#allocation7 + $0x2a8] sm:$0xff]  ;;  %v503_v56 = vld [vmem:[#allocation7 + $0x298] sm:$0xff]  ;;  %v1455_v58 = vpack.c.bf16 %v496_v50, %v492_v49 }
  0xa9   : > { %v507_v57 = vld [vmem:[#allocation7 + $0x2b8] sm:$0xff]  ;;  %v1583_v59 = vpack.c.bf16 %v498_v53, %v494_v51  ;;  %v1457_v60 = vpack.c.bf16 %v505_v55, %v501_v54  ;;  %v500_v61 = vld [vmem:[#allocation7 + $0x280] sm:$0xff]  ;;  %v502_v63 = vld [vmem:[#allocation7 + $0x290] sm:$0xff] }
  0xaa   : > { %1444 = vmatpush1.bf16.msra.mxu0 %v1443_v22  ;;  %v504_v62 = vld [vmem:[#allocation7 + $0x2a0] sm:$0xff]  ;;  %v1585_v0 = vpack.c.bf16 %v507_v57, %v503_v56  ;;  %v506_v1 = vld [vmem:[#allocation7 + $0x2b0] sm:$0xff]  ;;  %v509_v2 = vld [vmem:[#allocation7 + $0x2c8] sm:$0xff] }
  0xab   : > { %1572 = vmatpush1.bf16.msra.mxu1 %v1571_v23  ;;  %1446 = vmatprep.subr.bf16.mxu0 %v1445_v24  ;;  %v513_v3 = vld [vmem:[#allocation7 + $0x2e8] sm:$0xff]  ;;  %v511_v4 = vld [vmem:[#allocation7 + $0x2d8] sm:$0xff]  ;;  %v1459_v6 = vpack.c.bf16 %v504_v62, %v500_v61  ;;  %v508_v7 = vld [vmem:[#allocation7 + $0x2c0] sm:$0xff]  ;;  %v1587_v8 = vpack.c.bf16 %v506_v1, %v502_v63 }
  0xac   : > { %1574 = vmatprep.subr.bf16.mxu1 %v1573_v28  ;;  %v515_v5 = vld [vmem:[#allocation7 + $0x2f8] sm:$0xff]  ;;  %v1461_v9 = vpack.c.bf16 %v513_v3, %v509_v2  ;;  %v512_v10 = vld [vmem:[#allocation7 + $0x2e0] sm:$0xff]  ;;  %v510_v11 = vld [vmem:[#allocation7 + $0x2d0] sm:$0xff] }
  0xad   : > { %v514_v12 = vld [vmem:[#allocation7 + $0x2f0] sm:$0xff]  ;;  %v1589_v13 = vpack.c.bf16 %v515_v5, %v511_v4  ;;  %v517_v14 = vld [vmem:[#allocation7 + $0x308] sm:$0xff]  ;;  %v417_v16 = vld [vmem:[%s2220_s20 + $0x8] sm:$0xff]  ;;  %v1463_v19 = vpack.c.bf16 %v512_v10, %v508_v7 }
  0xae   : > { %1448 = vmatpush1.bf16.msra.mxu0 %v1447_v34  ;;  %v521_v15 = vld [vmem:[#allocation7 + $0x328] sm:$0xff]  ;;  %v519_v17 = vld [vmem:[#allocation7 + $0x318] sm:$0xff]  ;;  %762 = vmatprep.mubr.f32.mxu0 %v417_v16  ;;  %v1591_v20 = vpack.c.bf16 %v514_v12, %v510_v11  ;;  %v516_v22 = vld [vmem:[#allocation7 + $0x300] sm:$0xff] }
  0xaf   : > { %1576 = vmatpush1.bf16.msra.mxu1 %v1575_v35  ;;  %1450 = vmatprep.subr.bf16.mxu0 %v1449_v36  ;;  %v523_v18 = vld [vmem:[#allocation7 + $0x338] sm:$0xff]  ;;  %v1465_v21 = vpack.c.bf16 %v521_v15, %v517_v14  ;;  %v520_v23 = vld [vmem:[#allocation7 + $0x320] sm:$0xff]  ;;  %v518_v24 = vld [vmem:[#allocation7 + $0x310] sm:$0xff] }
  0xb0   : > { %1578 = vmatprep.subr.bf16.mxu1 %v1577_v40  ;;  %904 = vmatprep.mubr.f32.mxu1 %v417_v16  ;;  %v1593_v25 = vpack.c.bf16 %v523_v18, %v519_v17  ;;  %v522_v26 = vld [vmem:[#allocation7 + $0x330] sm:$0xff]  ;;  %v525_v27 = vld [vmem:[#allocation7 + $0x348] sm:$0xff]  ;;  %v527_v29 = vld [vmem:[#allocation7 + $0x358] sm:$0xff]  ;;  %v1467_v31 = vpack.c.bf16 %v520_v23, %v516_v22 }
  0xb1   : > { %v529_v28 = vld [vmem:[#allocation7 + $0x368] sm:$0xff]  ;;  %v531_v30 = vld [vmem:[#allocation7 + $0x378] sm:$0xff]  ;;  %v1595_v32 = vpack.c.bf16 %v522_v26, %v518_v24  ;;  %v524_v34 = vld [vmem:[#allocation7 + $0x340] sm:$0xff] }
  0xb2   : > { %1452 = vmatpush1.bf16.msra.mxu0 %v1451_v46  ;;  %v1469_v33 = vpack.c.bf16 %v529_v28, %v525_v27  ;;  %v528_v35 = vld [vmem:[#allocation7 + $0x360] sm:$0xff]  ;;  %v526_v36 = vld [vmem:[#allocation7 + $0x350] sm:$0xff]  ;;  %v1597_v37 = vpack.c.bf16 %v531_v30, %v527_v29  ;;  %v533_v39 = vld [vmem:[#allocation7 + $0x388] sm:$0xff] }
  0xb3   : > { %1580 = vmatpush1.bf16.msra.mxu1 %v1579_v47  ;;  %1454 = vmatprep.subr.bf16.mxu0 %v1453_v48  ;;  %v530_v38 = vld [vmem:[#allocation7 + $0x370] sm:$0xff]  ;;  %v537_v40 = vld [vmem:[#allocation7 + $0x3a8] sm:$0xff]  ;;  %v535_v41 = vld [vmem:[#allocation7 + $0x398] sm:$0xff]  ;;  %v1471_v43 = vpack.c.bf16 %v528_v35, %v524_v34 }
  0xb4   : > { %1582 = vmatprep.subr.bf16.mxu1 %v1581_v52  ;;  %v539_v42 = vld [vmem:[#allocation7 + $0x3b8] sm:$0xff]  ;;  %v1599_v44 = vpack.c.bf16 %v530_v38, %v526_v36  ;;  %v1473_v45 = vpack.c.bf16 %v537_v40, %v533_v39  ;;  %v532_v46 = vld [vmem:[#allocation7 + $0x380] sm:$0xff]  ;;  %v534_v48 = vld [vmem:[#allocation7 + $0x390] sm:$0xff] }
  0xb5   : > { %v536_v47 = vld [vmem:[#allocation7 + $0x3a0] sm:$0xff]  ;;  %v1601_v49 = vpack.c.bf16 %v539_v42, %v535_v41  ;;  %v538_v50 = vld [vmem:[#allocation7 + $0x3b0] sm:$0xff]  ;;  %v541_v51 = vld [vmem:[#allocation7 + $0x3c8] sm:$0xff] }
  0xb6   : > { %1456 = vmatpush1.bf16.msra.mxu0 %v1455_v58  ;;  %v545_v52 = vld [vmem:[#allocation7 + $0x3e8] sm:$0xff]  ;;  %v543_v53 = vld [vmem:[#allocation7 + $0x3d8] sm:$0xff]  ;;  %v1475_v55 = vpack.c.bf16 %v536_v47, %v532_v46  ;;  %v1603_v56 = vpack.c.bf16 %v538_v50, %v534_v48  ;;  %v540_v58 = vld [vmem:[#allocation7 + $0x3c0] sm:$0xff] }
  0xb7   : > { %1584 = vmatpush1.bf16.msra.mxu1 %v1583_v59  ;;  %1458 = vmatprep.subr.bf16.mxu0 %v1457_v60  ;;  %v547_v54 = vld [vmem:[#allocation7 + $0x3f8] sm:$0xff]  ;;  %v1477_v57 = vpack.c.bf16 %v545_v52, %v541_v51  ;;  %v544_v59 = vld [vmem:[#allocation7 + $0x3e0] sm:$0xff]  ;;  %v542_v60 = vld [vmem:[#allocation7 + $0x3d0] sm:$0xff] }
  0xb8   : > { %1586 = vmatprep.subr.bf16.mxu1 %v1585_v0  ;;  %v1605_v61 = vpack.c.bf16 %v547_v54, %v543_v53  ;;  %v546_v62 = vld [vmem:[#allocation7 + $0x3f0] sm:$0xff]  ;;  %v549_v63 = vld [vmem:[#allocation7 + $0x408] sm:$0xff]  ;;  %v551_v1 = vld [vmem:[#allocation7 + $0x418] sm:$0xff]  ;;  %v1479_v3 = vpack.c.bf16 %v544_v59, %v540_v58 }
  0xb9   : > { %v553_v0 = vld [vmem:[#allocation7 + $0x428] sm:$0xff]  ;;  %v555_v2 = vld [vmem:[#allocation7 + $0x438] sm:$0xff]  ;;  %v1607_v4 = vpack.c.bf16 %v546_v62, %v542_v60  ;;  %v552_v7 = vld [vmem:[#allocation7 + $0x420] sm:$0xff] }
  0xba   : > { %1460 = vmatpush1.bf16.msra.mxu0 %v1459_v6  ;;  %v1481_v5 = vpack.c.bf16 %v553_v0, %v549_v63  ;;  %v548_v6 = vld [vmem:[#allocation7 + $0x400] sm:$0xff]  ;;  %v554_v10 = vld [vmem:[#allocation7 + $0x430] sm:$0xff]  ;;  %v557_v11 = vld [vmem:[#allocation7 + $0x448] sm:$0xff] }
  0xbb   : > { %1588 = vmatpush1.bf16.msra.mxu1 %v1587_v8  ;;  %1462 = vmatprep.subr.bf16.mxu0 %v1461_v9  ;;  %v550_v8 = vld [vmem:[#allocation7 + $0x410] sm:$0xff]  ;;  %v1609_v9 = vpack.c.bf16 %v555_v2, %v551_v1  ;;  %v561_v12 = vld [vmem:[#allocation7 + $0x468] sm:$0xff]  ;;  %v563_v14 = vld [vmem:[#allocation7 + $0x478] sm:$0xff]  ;;  %v1483_v16 = vpack.c.bf16 %v552_v7, %v548_v6 }
  0xbc   : > { %1590 = vmatprep.subr.bf16.mxu1 %v1589_v13  ;;  %v559_v13 = vld [vmem:[#allocation7 + $0x458] sm:$0xff]  ;;  %v416_v15 = vld [vmem:[%s2220_s20] sm:$0xff]  ;;  %v1611_v17 = vpack.c.bf16 %v554_v10, %v550_v8  ;;  %v1485_v18 = vpack.c.bf16 %v561_v12, %v557_v11  ;;  %v565_v24 = vld [vmem:[#allocation7 + $0x488] sm:$0xff] }
  0xbd   : > { %v1613_v22 = vpack.c.bf16 %v563_v14, %v559_v13  ;;  %v562_v23 = vld [vmem:[#allocation7 + $0x470] sm:$0xff]  ;;  %v567_v26 = vld [vmem:[#allocation7 + $0x498] sm:$0xff]  ;;  %v573_v36 = vld [vmem:[#allocation7 + $0x4c8] sm:$0xff] }
  0xbe   : > { %1464 = vmatpush1.bf16.msra.mxu0 %v1463_v19  ;;  %v556_v19 = vld [vmem:[#allocation7 + $0x440] sm:$0xff]  ;;  %v571_v27 = vld [vmem:[#allocation7 + $0x4b8] sm:$0xff]  ;;  %v570_v35 = vld [vmem:[#allocation7 + $0x4b0] sm:$0xff] }
  0xbf   : > { %1592 = vmatpush1.bf16.msra.mxu1 %v1591_v20  ;;  %1466 = vmatprep.subr.bf16.mxu0 %v1465_v21  ;;  %v560_v20 = vld [vmem:[#allocation7 + $0x460] sm:$0xff]  ;;  %v558_v21 = vld [vmem:[#allocation7 + $0x450] sm:$0xff]  ;;  %v1617_v34 = vpack.c.bf16 %v571_v27, %v567_v26  ;;  %v575_v38 = vld [vmem:[#allocation7 + $0x4d8] sm:$0xff] }
  0xc0   : > { %1594 = vmatprep.subr.bf16.mxu1 %v1593_v25  ;;  %v569_v25 = vld [vmem:[#allocation7 + $0x4a8] sm:$0xff]  ;;  %v1487_v28 = vpack.c.bf16 %v560_v20, %v556_v19  ;;  %v1615_v29 = vpack.c.bf16 %v562_v23, %v558_v21  ;;  %v579_v39 = vld [vmem:[#allocation7 + $0x4f8] sm:$0xff]  ;;  %v578_v47 = vld [vmem:[#allocation7 + $0x4f0] sm:$0xff] }
  0xc1   : > { %v1489_v30 = vpack.c.bf16 %v569_v25, %v565_v24  ;;  %v1621_v46 = vpack.c.bf16 %v579_v39, %v575_v38  ;;  %v581_v48 = vld [vmem:[#allocation7 + $0x508] sm:$0xff]  ;;  %v583_v50 = vld [vmem:[#allocation7 + $0x518] sm:$0xff]  ;;  %v586_v59 = vld [vmem:[#allocation7 + $0x530] sm:$0xff] }
  0xc2   : > { %1468 = vmatpush1.bf16.msra.mxu0 %v1467_v31  ;;  %v564_v31 = vld [vmem:[#allocation7 + $0x480] sm:$0xff]  ;;  %v587_v51 = vld [vmem:[#allocation7 + $0x538] sm:$0xff]  ;;  %v589_v60 = vld [vmem:[#allocation7 + $0x548] sm:$0xff] }
  0xc3   : > { %1596 = vmatpush1.bf16.msra.mxu1 %v1595_v32  ;;  %1470 = vmatprep.subr.bf16.mxu0 %v1469_v33  ;;  %v568_v32 = vld [vmem:[#allocation7 + $0x4a0] sm:$0xff]  ;;  %v566_v33 = vld [vmem:[#allocation7 + $0x490] sm:$0xff]  ;;  %v1625_v58 = vpack.c.bf16 %v587_v51, %v583_v50  ;;  %v591_v62 = vld [vmem:[#allocation7 + $0x558] sm:$0xff] }
  0xc4   : > { %1598 = vmatprep.subr.bf16.mxu1 %v1597_v37  ;;  %v577_v37 = vld [vmem:[#allocation7 + $0x4e8] sm:$0xff]  ;;  %v1491_v40 = vpack.c.bf16 %v568_v32, %v564_v31  ;;  %v1619_v41 = vpack.c.bf16 %v570_v35, %v566_v33  ;;  %v595_v63 = vld [vmem:[#allocation7 + $0x578] sm:$0xff]  ;;  %v594_v7 = vld [vmem:[#allocation7 + $0x570] sm:$0xff] }
  0xc5   : > { %v1493_v42 = vpack.c.bf16 %v577_v37, %v573_v36  ;;  %v1629_v6 = vpack.c.bf16 %v595_v63, %v591_v62  ;;  %v597_v8 = vld [vmem:[#allocation7 + $0x588] sm:$0xff]  ;;  %v599_v10 = vld [vmem:[#allocation7 + $0x598] sm:$0xff]  ;;  %v596_v13 = vld [vmem:[#allocation7 + $0x580] sm:$0xff] }
  0xc6   : > { %1472 = vmatpush1.bf16.msra.mxu0 %v1471_v43  ;;  %v572_v43 = vld [vmem:[#allocation7 + $0x4c0] sm:$0xff]  ;;  %v603_v11 = vld [vmem:[#allocation7 + $0x5b8] sm:$0xff]  ;;  %v605_v20 = vld [vmem:[#allocation7 + $0x5c8] sm:$0xff] }
  0xc7   : > { %1600 = vmatpush1.bf16.msra.mxu1 %v1599_v44  ;;  %1474 = vmatprep.subr.bf16.mxu0 %v1473_v45  ;;  %v576_v44 = vld [vmem:[#allocation7 + $0x4e0] sm:$0xff]  ;;  %v574_v45 = vld [vmem:[#allocation7 + $0x4d0] sm:$0xff]  ;;  %v1633_v19 = vpack.c.bf16 %v603_v11, %v599_v10  ;;  %v609_v21 = vld [vmem:[#allocation7 + $0x5e8] sm:$0xff] }
  0xc8   : > { %1602 = vmatprep.subr.bf16.mxu1 %v1601_v49  ;;  %v585_v49 = vld [vmem:[#allocation7 + $0x528] sm:$0xff]  ;;  %v1495_v52 = vpack.c.bf16 %v576_v44, %v572_v43  ;;  %v1623_v53 = vpack.c.bf16 %v578_v47, %v574_v45  ;;  %v607_v23 = vld [vmem:[#allocation7 + $0x5d8] sm:$0xff]  ;;  %v1509_v27 = vpack.c.bf16 %v609_v21, %v605_v20  ;;  %v610_v32 = vld [vmem:[#allocation7 + $0x5f0] sm:$0xff] }
  0xc9   : > { %v1497_v54 = vpack.c.bf16 %v585_v49, %v581_v48  ;;  %v611_v24 = vld [vmem:[#allocation7 + $0x5f8] sm:$0xff]  ;;  %v613_v33 = vld [vmem:[#allocation7 + $0x608] sm:$0xff]  ;;  %v618_v44 = vld [vmem:[#allocation7 + $0x630] sm:$0xff] }
  0xca   : > { %1476 = vmatpush1.bf16.msra.mxu0 %v1475_v55  ;;  %v580_v55 = vld [vmem:[#allocation7 + $0x500] sm:$0xff]  ;;  %v1637_v31 = vpack.c.bf16 %v611_v24, %v607_v23  ;;  %v615_v35 = vld [vmem:[#allocation7 + $0x618] sm:$0xff]  ;;  %v621_v45 = vld [vmem:[#allocation7 + $0x648] sm:$0xff] }
  0xcb   : > { %1604 = vmatpush1.bf16.msra.mxu1 %v1603_v56  ;;  %1478 = vmatprep.subr.bf16.mxu0 %v1477_v57  ;;  %v584_v56 = vld [vmem:[#allocation7 + $0x520] sm:$0xff]  ;;  %v582_v57 = vld [vmem:[#allocation7 + $0x510] sm:$0xff]  ;;  %v619_v36 = vld [vmem:[#allocation7 + $0x638] sm:$0xff] }
  0xcc   : > { %1606 = vmatprep.subr.bf16.mxu1 %v1605_v61  ;;  %v593_v61 = vld [vmem:[#allocation7 + $0x568] sm:$0xff]  ;;  %v1499_v0 = vpack.c.bf16 %v584_v56, %v580_v55  ;;  %v1627_v1 = vpack.c.bf16 %v586_v59, %v582_v57  ;;  %v1641_v43 = vpack.c.bf16 %v619_v36, %v615_v35  ;;  %v623_v47 = vld [vmem:[#allocation7 + $0x658] sm:$0xff]  ;;  %v626_v56 = vld [vmem:[#allocation7 + $0x670] sm:$0xff] }
  0xcd   : > { %v1501_v2 = vpack.c.bf16 %v593_v61, %v589_v60  ;;  %v627_v48 = vld [vmem:[#allocation7 + $0x678] sm:$0xff]  ;;  %v629_v57 = vld [vmem:[#allocation7 + $0x688] sm:$0xff]  ;;  %v644_v24 = vld [vmem:[#allocation7 + $0x700] sm:$0xff] }
  0xce   : > { %1480 = vmatpush1.bf16.msra.mxu0 %v1479_v3  ;;  %v588_v3 = vld [vmem:[#allocation7 + $0x540] sm:$0xff]  ;;  %v1645_v55 = vpack.c.bf16 %v627_v48, %v623_v47  ;;  %v631_v59 = vld [vmem:[#allocation7 + $0x698] sm:$0xff] }
  0xcf   : > { %1608 = vmatpush1.bf16.msra.mxu1 %v1607_v4  ;;  %1482 = vmatprep.subr.bf16.mxu0 %v1481_v5  ;;  %v592_v4 = vld [vmem:[#allocation7 + $0x560] sm:$0xff]  ;;  %v590_v5 = vld [vmem:[#allocation7 + $0x550] sm:$0xff]  ;;  %v635_v60 = vld [vmem:[#allocation7 + $0x6b8] sm:$0xff] }
  0xd0   : > { %1610 = vmatprep.subr.bf16.mxu1 %v1609_v9  ;;  %v601_v9 = vld [vmem:[#allocation7 + $0x5a8] sm:$0xff]  ;;  %v1503_v12 = vpack.c.bf16 %v592_v4, %v588_v3  ;;  %v1631_v14 = vpack.c.bf16 %v594_v7, %v590_v5  ;;  %v1649_v3 = vpack.c.bf16 %v635_v60, %v631_v59  ;;  %v634_v4 = vld [vmem:[#allocation7 + $0x6b0] sm:$0xff]  ;;  %v639_v7 = vld [vmem:[#allocation7 + $0x6d8] sm:$0xff] }
  0xd1   : > { %763 = vmatmul.mubr.f32.vlgmr.msra.gmra.mrb[0].mxu0 %v416_v15  ;;  %v637_v5 = vld [vmem:[#allocation7 + $0x6c8] sm:$0xff]  ;;  %v651_v20 = vld [vmem:[#allocation7 + $0x738] sm:$0xff]  ;;  %v652_v36 = vld [vmem:[#allocation7 + $0x740] sm:$0xff] }
  0xd2   : > { %1484 = vmatpush1.bf16.msra.mxu0 %v1483_v16  ;;  %905 = vmatmul.mubr.f32.vlgmr.msra.gmra.mrb[0].mxu1 %v416_v15  ;;  %v1505_v15 = vpack.c.bf16 %v601_v9, %v597_v8  ;;  %v600_v16 = vld [vmem:[#allocation7 + $0x5a0] sm:$0xff]  ;;  %v643_v8 = vld [vmem:[#allocation7 + $0x6f8] sm:$0xff] }
  0xd3   : > { %1612 = vmatpush1.bf16.msra.mxu1 %v1611_v17  ;;  %1486 = vmatprep.subr.bf16.mxu0 %v1485_v18  ;;  %v598_v17 = vld [vmem:[#allocation7 + $0x590] sm:$0xff]  ;;  %v1507_v25 = vpack.c.bf16 %v600_v16, %v596_v13  ;;  %v640_v13 = vld [vmem:[#allocation7 + $0x6e0] sm:$0xff] }
  0xd4   : > { %1614 = vmatprep.subr.bf16.mxu1 %v1613_v22  ;;  %v602_v18 = vld [vmem:[#allocation7 + $0x5b0] sm:$0xff]  ;;  %v419_v22 = vld [vmem:[%s2220_s20 + $0x18] sm:$0xff]  ;;  %v660_v48 = vld [vmem:[#allocation7 + $0x780] sm:$0xff] }
  0xd5   : > { %833 = vmatprep.mubr.f32.mxu0 %v419_v22  ;;  %975 = vmatprep.mubr.f32.mxu1 %v419_v22  ;;  %v1635_v26 = vpack.c.bf16 %v602_v18, %v598_v17  ;;  %v642_v16 = vld [vmem:[#allocation7 + $0x6f0] sm:$0xff]  ;;  %v645_v17 = vld [vmem:[#allocation7 + $0x708] sm:$0xff]  ;;  %v668_v60 = vld [vmem:[#allocation7 + $0x7c0] sm:$0xff] }
  0xd6   : > { %1488 = vmatpush1.bf16.msra.mxu0 %v1487_v28  ;;  %v604_v28 = vld [vmem:[#allocation7 + $0x5c0] sm:$0xff]  ;;  %v649_v18 = vld [vmem:[#allocation7 + $0x728] sm:$0xff] }
  0xd7   : > { %1616 = vmatpush1.bf16.msra.mxu1 %v1615_v29  ;;  %1490 = vmatprep.subr.bf16.mxu0 %v1489_v30  ;;  %v608_v29 = vld [vmem:[#allocation7 + $0x5e0] sm:$0xff]  ;;  %v606_v30 = vld [vmem:[#allocation7 + $0x5d0] sm:$0xff]  ;;  %v1529_v23 = vpack.c.bf16 %v649_v18, %v645_v17 }
  0xd8   : > { %1618 = vmatprep.subr.bf16.mxu1 %v1617_v34  ;;  %v617_v34 = vld [vmem:[#allocation7 + $0x628] sm:$0xff]  ;;  %v1511_v37 = vpack.c.bf16 %v608_v29, %v604_v28  ;;  %v1639_v38 = vpack.c.bf16 %v610_v32, %v606_v30  ;;  %v650_v28 = vld [vmem:[#allocation7 + $0x730] sm:$0xff]  ;;  %v659_v32 = vld [vmem:[#allocation7 + $0x778] sm:$0xff] }
  0xd9   : > { %v1513_v39 = vpack.c.bf16 %v617_v34, %v613_v33  ;;  %v653_v29 = vld [vmem:[#allocation7 + $0x748] sm:$0xff]  ;;  %v418_v17 = vld [vmem:[%s2220_s20 + $0x10] sm:$0xff] }
  0xda   : > { %1492 = vmatpush1.bf16.msra.mxu0 %v1491_v40  ;;  %v612_v40 = vld [vmem:[#allocation7 + $0x600] sm:$0xff]  ;;  %v657_v30 = vld [vmem:[#allocation7 + $0x768] sm:$0xff] }
  0xdb   : > { %1620 = vmatpush1.bf16.msra.mxu1 %v1619_v41  ;;  %1494 = vmatprep.subr.bf16.mxu0 %v1493_v42  ;;  %v616_v41 = vld [vmem:[#allocation7 + $0x620] sm:$0xff]  ;;  %v614_v42 = vld [vmem:[#allocation7 + $0x610] sm:$0xff]  ;;  %v1533_v35 = vpack.c.bf16 %v657_v30, %v653_v29  ;;  %v1010_v29 = vld [vmem:[#allocation8 + $0xb8] sm:$0xff] }
  0xdc   : > { %1622 = vmatprep.subr.bf16.mxu1 %v1621_v46  ;;  %v625_v46 = vld [vmem:[#allocation7 + $0x668] sm:$0xff]  ;;  %v1515_v49 = vpack.c.bf16 %v616_v41, %v612_v40  ;;  %v1643_v50 = vpack.c.bf16 %v618_v44, %v614_v42  ;;  %v658_v40 = vld [vmem:[#allocation7 + $0x770] sm:$0xff]  ;;  %v667_v44 = vld [vmem:[#allocation7 + $0x7b8] sm:$0xff] }
  0xdd   : > { %v1517_v51 = vpack.c.bf16 %v625_v46, %v621_v45  ;;  %v661_v41 = vld [vmem:[#allocation7 + $0x788] sm:$0xff] }
  0xde   : > { %1496 = vmatpush1.bf16.msra.mxu0 %v1495_v52  ;;  %v620_v52 = vld [vmem:[#allocation7 + $0x640] sm:$0xff]  ;;  %v665_v42 = vld [vmem:[#allocation7 + $0x7a8] sm:$0xff] }
  0xdf   : > { %1624 = vmatpush1.bf16.msra.mxu1 %v1623_v53  ;;  %1498 = vmatprep.subr.bf16.mxu0 %v1497_v54  ;;  %v624_v53 = vld [vmem:[#allocation7 + $0x660] sm:$0xff]  ;;  %v622_v54 = vld [vmem:[#allocation7 + $0x650] sm:$0xff]  ;;  %v1537_v47 = vpack.c.bf16 %v665_v42, %v661_v41  ;;  %v1014_v41 = vld [vmem:[#allocation8 + $0xd8] sm:$0xff] }
  0xe0   : > { %1626 = vmatprep.subr.bf16.mxu1 %v1625_v58  ;;  %v633_v58 = vld [vmem:[#allocation7 + $0x6a8] sm:$0xff]  ;;  %v1519_v61 = vpack.c.bf16 %v624_v53, %v620_v52  ;;  %v1647_v62 = vpack.c.bf16 %v626_v56, %v622_v54  ;;  %v666_v52 = vld [vmem:[#allocation7 + $0x7b0] sm:$0xff]  ;;  %v675_v56 = vld [vmem:[#allocation7 + $0x7f8] sm:$0xff] }
  0xe1   : > { %v1521_v63 = vpack.c.bf16 %v633_v58, %v629_v57  ;;  %v669_v53 = vld [vmem:[#allocation7 + $0x7c8] sm:$0xff]  ;;  %v1018_v42 = vld [vmem:[#allocation8 + $0xf8] sm:$0xff] }
  0xe2   : > { %1500 = vmatpush1.bf16.msra.mxu0 %v1499_v0  ;;  %v628_v0 = vld [vmem:[#allocation7 + $0x680] sm:$0xff]  ;;  %v673_v54 = vld [vmem:[#allocation7 + $0x7e8] sm:$0xff] }
  0xe3   : > { %1628 = vmatpush1.bf16.msra.mxu1 %v1627_v1  ;;  %1502 = vmatprep.subr.bf16.mxu0 %v1501_v2  ;;  %v632_v1 = vld [vmem:[#allocation7 + $0x6a0] sm:$0xff]  ;;  %v630_v2 = vld [vmem:[#allocation7 + $0x690] sm:$0xff]  ;;  %v1541_v59 = vpack.c.bf16 %v673_v54, %v669_v53  ;;  %v1022_v53 = vld [vmem:[#allocation8 + $0x118] sm:$0xff] }
  0xe4   : > { %1630 = vmatprep.subr.bf16.mxu1 %v1629_v6  ;;  %v641_v6 = vld [vmem:[#allocation7 + $0x6e8] sm:$0xff]  ;;  %v1523_v9 = vpack.c.bf16 %v632_v1, %v628_v0  ;;  %v1651_v10 = vpack.c.bf16 %v634_v4, %v630_v2  ;;  %v674_v0 = vld [vmem:[#allocation7 + $0x7f0] sm:$0xff]  ;;  %v994_v4 = vld [vmem:[#allocation8 + $0x38] sm:$0xff] }
  0xe5   : > { %v1525_v11 = vpack.c.bf16 %v641_v6, %v637_v5  ;;  %v988_v1 = vld [vmem:[#allocation8 + $0x8] sm:$0xff]  ;;  %v1026_v54 = vld [vmem:[#allocation8 + $0x138] sm:$0xff] }
  0xe6   : > { %1504 = vmatpush1.bf16.msra.mxu0 %v1503_v12  ;;  %v636_v12 = vld [vmem:[#allocation7 + $0x6c0] sm:$0xff]  ;;  %v992_v2 = vld [vmem:[#allocation8 + $0x28] sm:$0xff] }
  0xe7   : > { %1632 = vmatpush1.bf16.msra.mxu1 %v1631_v14  ;;  %1506 = vmatprep.subr.bf16.mxu0 %v1505_v15  ;;  %v638_v14 = vld [vmem:[#allocation7 + $0x6d0] sm:$0xff]  ;;  %v1653_v15 = vpack.c.bf16 %v643_v8, %v639_v7  ;;  %v1527_v21 = vpack.c.bf16 %v640_v13, %v636_v12  ;;  %v1673_v7 = vpack.c.bf16 %v992_v2, %v988_v1  ;;  %v987_v8 = vld [vmem:[#allocation8] sm:$0xff]  ;;  %v996_v13 = vld [vmem:[#allocation8 + $0x48] sm:$0xff] }
  0xe8   : > { %1634 = vmatprep.subr.bf16.mxu1 %v1633_v19  ;;  %v647_v19 = vld [vmem:[#allocation7 + $0x718] sm:$0xff]  ;;  %v1655_v22 = vpack.c.bf16 %v642_v16, %v638_v14  ;;  %v993_v12 = vld [vmem:[#allocation8 + $0x30] sm:$0xff]  ;;  %v1000_v14 = vld [vmem:[#allocation8 + $0x68] sm:$0xff] }
  0xe9   : > { %v1002_v16 = vld [vmem:[#allocation8 + $0x78] sm:$0xff] }
  0xea   : > { %1508 = vmatpush1.bf16.msra.mxu0 %v1507_v25  ;;  %v648_v25 = vld [vmem:[#allocation7 + $0x720] sm:$0xff]  ;;  %v1030_v1 = vld [vmem:[#allocation8 + $0x158] sm:$0xff] }
  0xeb   : > { %1636 = vmatpush1.bf16.msra.mxu1 %v1635_v26  ;;  %1510 = vmatprep.subr.bf16.mxu0 %v1509_v27  ;;  %v646_v26 = vld [vmem:[#allocation7 + $0x710] sm:$0xff]  ;;  %v1657_v27 = vpack.c.bf16 %v651_v20, %v647_v19  ;;  %v1531_v33 = vpack.c.bf16 %v648_v25, %v644_v24  ;;  %v1677_v20 = vpack.c.bf16 %v1000_v14, %v996_v13  ;;  %v1034_v2 = vld [vmem:[#allocation8 + $0x178] sm:$0xff] }
  0xec   : > { %1638 = vmatprep.subr.bf16.mxu1 %v1637_v31  ;;  %v655_v31 = vld [vmem:[#allocation7 + $0x758] sm:$0xff]  ;;  %v1659_v34 = vpack.c.bf16 %v650_v28, %v646_v26  ;;  %v1001_v25 = vld [vmem:[#allocation8 + $0x70] sm:$0xff]  ;;  %v1004_v26 = vld [vmem:[#allocation8 + $0x88] sm:$0xff] }
  0xed   : > { %v1006_v28 = vld [vmem:[#allocation8 + $0x98] sm:$0xff] }
  0xee   : > { %1512 = vmatpush1.bf16.msra.mxu0 %v1511_v37  ;;  %v656_v37 = vld [vmem:[#allocation7 + $0x760] sm:$0xff]  ;;  %v1038_v13 = vld [vmem:[#allocation8 + $0x198] sm:$0xff] }
  0xef   : > { %1640 = vmatpush1.bf16.msra.mxu1 %v1639_v38  ;;  %1514 = vmatprep.subr.bf16.mxu0 %v1513_v39  ;;  %v654_v38 = vld [vmem:[#allocation7 + $0x750] sm:$0xff]  ;;  %v1661_v39 = vpack.c.bf16 %v659_v32, %v655_v31  ;;  %v1535_v45 = vpack.c.bf16 %v656_v37, %v652_v36  ;;  %v1713_v36 = vpack.c.bf16 %v1010_v29, %v1006_v28  ;;  %v1042_v14 = vld [vmem:[#allocation8 + $0x1b8] sm:$0xff] }
  0xf0   : > { %1642 = vmatprep.subr.bf16.mxu1 %v1641_v43  ;;  %v663_v43 = vld [vmem:[#allocation7 + $0x798] sm:$0xff]  ;;  %v1663_v46 = vpack.c.bf16 %v658_v40, %v654_v38  ;;  %v1009_v37 = vld [vmem:[#allocation8 + $0xb0] sm:$0xff]  ;;  %v1012_v38 = vld [vmem:[#allocation8 + $0xc8] sm:$0xff]  ;;  %v1987_v40 = vmov 0.0  }
  0xf2   : > { %1516 = vmatpush1.bf16.msra.mxu0 %v1515_v49  ;;  %v664_v49 = vld [vmem:[#allocation7 + $0x7a0] sm:$0xff] }
  0xf3   : > { %1644 = vmatpush1.bf16.msra.mxu1 %v1643_v50  ;;  %1518 = vmatprep.subr.bf16.mxu0 %v1517_v51  ;;  %v662_v50 = vld [vmem:[#allocation7 + $0x790] sm:$0xff]  ;;  %v1665_v51 = vpack.c.bf16 %v667_v44, %v663_v43  ;;  %v1539_v57 = vpack.c.bf16 %v664_v49, %v660_v48  ;;  %v1717_v49 = vpack.c.bf16 %v1018_v42, %v1014_v41  ;;  %v678_v42 = vlaneseq }
  0xf4   : > { %1646 = vmatprep.subr.bf16.mxu1 %v1645_v55  ;;  %v671_v55 = vld [vmem:[#allocation7 + $0x7d8] sm:$0xff]  ;;  %v1667_v58 = vpack.c.bf16 %v666_v52, %v662_v50  ;;  %v1013_v48 = vld [vmem:[#allocation8 + $0xd0] sm:$0xff]  ;;  %v1024_v52 = vld [vmem:[#allocation8 + $0x128] sm:$0xff] }
  0xf5   : > { %v1017_v50 = vld [vmem:[#allocation8 + $0xf0] sm:$0xff] }
  0xf6   : > { %1520 = vmatpush1.bf16.msra.mxu0 %v1519_v61  ;;  %v672_v61 = vld [vmem:[#allocation7 + $0x7e0] sm:$0xff] }
  0xf7   : > { %1648 = vmatpush1.bf16.msra.mxu1 %v1647_v62  ;;  %1522 = vmatprep.subr.bf16.mxu0 %v1521_v63  ;;  %v670_v62 = vld [vmem:[#allocation7 + $0x7d0] sm:$0xff]  ;;  %v1669_v63 = vpack.c.bf16 %v675_v56, %v671_v55  ;;  %v1543_v5 = vpack.c.bf16 %v672_v61, %v668_v60  ;;  %v1719_v56 = vpack.c.bf16 %v1017_v50, %v1013_v48 }
  0xf8   : > { %1650 = vmatprep.subr.bf16.mxu1 %v1649_v3  ;;  %v990_v3 = vld [vmem:[#allocation8 + $0x18] sm:$0xff]  ;;  %v1671_v6 = vpack.c.bf16 %v674_v0, %v670_v62  ;;  %v1021_v60 = vld [vmem:[#allocation8 + $0x110] sm:$0xff]  ;;  %v1721_v61 = vpack.c.bf16 %v1026_v54, %v1022_v53  ;;  %v1032_v0 = vld [vmem:[#allocation8 + $0x168] sm:$0xff] }
  0xf9   : > { %v1025_v62 = vld [vmem:[#allocation8 + $0x130] sm:$0xff] }
  0xfa   : > { %1524 = vmatpush1.bf16.msra.mxu0 %v1523_v9  ;;  %v991_v9 = vld [vmem:[#allocation8 + $0x20] sm:$0xff]  ;;  %v1219_v54 = vld [vmem:[%s2282_s6] sm:$0xf] }
  0xfb   : > { %1652 = vmatpush1.bf16.msra.mxu1 %v1651_v10  ;;  %1526 = vmatprep.subr.bf16.mxu0 %v1525_v11  ;;  %v989_v10 = vld [vmem:[#allocation8 + $0x10] sm:$0xff]  ;;  %v1705_v11 = vpack.c.bf16 %v994_v4, %v990_v3  ;;  %v1675_v18 = vpack.c.bf16 %v991_v9, %v987_v8  ;;  %v1723_v4 = vpack.c.bf16 %v1025_v62, %v1021_v60 }
  0xfc   : > { %1654 = vmatprep.subr.bf16.mxu1 %v1653_v15  ;;  %v998_v15 = vld [vmem:[#allocation8 + $0x58] sm:$0xff]  ;;  %v1707_v19 = vpack.c.bf16 %v993_v12, %v989_v10  ;;  %v1029_v8 = vld [vmem:[#allocation8 + $0x150] sm:$0xff]  ;;  %v1725_v9 = vpack.c.bf16 %v1034_v2, %v1030_v1  ;;  %v1040_v12 = vld [vmem:[#allocation8 + $0x1a8] sm:$0xff] }
  0xfd   : > { %v1709_v24 = vpack.c.bf16 %v1002_v16, %v998_v15  ;;  %v1033_v10 = vld [vmem:[#allocation8 + $0x170] sm:$0xff] }
  0xfe   : > { %1528 = vmatpush1.bf16.msra.mxu0 %v1527_v21  ;;  %v995_v21 = vld [vmem:[#allocation8 + $0x40] sm:$0xff]  ;;  %v1727_v16 = vpack.c.bf16 %v1033_v10, %v1029_v8 }
  0xff   : > { %1656 = vmatpush1.bf16.msra.mxu1 %v1655_v22  ;;  %1530 = vmatprep.subr.bf16.mxu0 %v1529_v23  ;;  %v999_v22 = vld [vmem:[#allocation8 + $0x60] sm:$0xff]  ;;  %v997_v23 = vld [vmem:[#allocation8 + $0x50] sm:$0xff] }
 0x100   : > { %1658 = vmatprep.subr.bf16.mxu1 %v1657_v27  ;;  %v1008_v27 = vld [vmem:[#allocation8 + $0xa8] sm:$0xff]  ;;  %v1679_v30 = vpack.c.bf16 %v999_v22, %v995_v21  ;;  %v1711_v31 = vpack.c.bf16 %v1001_v25, %v997_v23  ;;  %v1729_v21 = vpack.c.bf16 %v1042_v14, %v1038_v13  ;;  %v1041_v22 = vld [vmem:[#allocation8 + $0x1b0] sm:$0xff]  ;;  %v1046_v25 = vld [vmem:[#allocation8 + $0x1d8] sm:$0xff] }
 0x101   : > { %v1681_v32 = vpack.c.bf16 %v1008_v27, %v1004_v26  ;;  %v1044_v23 = vld [vmem:[#allocation8 + $0x1c8] sm:$0xff]  ;;  %v1050_v26 = vld [vmem:[#allocation8 + $0x1f8] sm:$0xff] }
 0x102   : > { %1532 = vmatpush1.bf16.msra.mxu0 %v1531_v33  ;;  %v1003_v33 = vld [vmem:[#allocation8 + $0x80] sm:$0xff] }
 0x103   : > { %1660 = vmatpush1.bf16.msra.mxu1 %v1659_v34  ;;  %1534 = vmatprep.subr.bf16.mxu0 %v1533_v35  ;;  %v1007_v34 = vld [vmem:[#allocation8 + $0xa0] sm:$0xff]  ;;  %v1005_v35 = vld [vmem:[#allocation8 + $0x90] sm:$0xff] }
 0x104   : > { %1662 = vmatprep.subr.bf16.mxu1 %v1661_v39  ;;  %v1016_v39 = vld [vmem:[#allocation8 + $0xe8] sm:$0xff]  ;;  %v1683_v43 = vpack.c.bf16 %v1007_v34, %v1003_v33  ;;  %v1715_v44 = vpack.c.bf16 %v1009_v37, %v1005_v35  ;;  %v1045_v33 = vld [vmem:[#allocation8 + $0x1d0] sm:$0xff] }
 0x105   : > { %v1049_v34 = vld [vmem:[#allocation8 + $0x1f0] sm:$0xff] }
 0x106   : > { %1536 = vmatpush1.bf16.msra.mxu0 %v1535_v45  ;;  %v1685_v45 = vpack.c.bf16 %v1016_v39, %v1012_v38  ;;  %v986_v37 = vld [vmem:[%s2227_s17] sm:$0xff] }
 0x107   : > { %1664 = vmatpush1.bf16.msra.mxu1 %v1663_v46  ;;  %1538 = vmatprep.subr.bf16.mxu0 %v1537_v47  ;;  %v1011_v46 = vld [vmem:[#allocation8 + $0xc0] sm:$0xff] }
 0x108   : > { %1666 = vmatprep.subr.bf16.mxu1 %v1665_v51  ;;  %v1015_v47 = vld [vmem:[#allocation8 + $0xe0] sm:$0xff]  ;;  %v1020_v51 = vld [vmem:[#allocation8 + $0x108] sm:$0xff] }
 0x109   : > { %v1687_v55 = vpack.c.bf16 %v1015_v47, %v1011_v46 }
 0x10a   : > { %1540 = vmatpush1.bf16.msra.mxu0 %v1539_v57  ;;  %v1689_v57 = vpack.c.bf16 %v1024_v52, %v1020_v51  ;;  %v1051_v52 = vld [vmem:[%s2281_s5] sm:$0xf] }
 0x10b   : > { %1668 = vmatpush1.bf16.msra.mxu1 %v1667_v58  ;;  %1542 = vmatprep.subr.bf16.mxu0 %v1541_v59  ;;  %v1019_v58 = vld [vmem:[#allocation8 + $0x100] sm:$0xff] }
 0x10c   : > { %1670 = vmatprep.subr.bf16.mxu1 %v1669_v63  ;;  %v1023_v59 = vld [vmem:[#allocation8 + $0x120] sm:$0xff]  ;;  %v1028_v63 = vld [vmem:[#allocation8 + $0x148] sm:$0xff] }
 0x10d   : > { %v1691_v3 = vpack.c.bf16 %v1023_v59, %v1019_v58 }
 0x10e   : > { %1544 = vmatpush1.bf16.msra.mxu0 %v1543_v5  ;;  %v1693_v5 = vpack.c.bf16 %v1032_v0, %v1028_v63 }
 0x10f   : > { %1672 = vmatpush1.bf16.msra.mxu1 %v1671_v6  ;;  %1674 = vmatprep.subr.bf16.mxu0 %v1673_v7  ;;  %v1027_v6 = vld [vmem:[#allocation8 + $0x140] sm:$0xff] }
 0x110   : > { %1706 = vmatprep.subr.bf16.mxu1 %v1705_v11  ;;  %v1031_v7 = vld [vmem:[#allocation8 + $0x160] sm:$0xff]  ;;  %v1036_v11 = vld [vmem:[#allocation8 + $0x188] sm:$0xff] }
 0x111   : > { %834 = vmatmul.mubr.f32.vlgmr.msra.gmra.mrb[0].mxu0 %v418_v17  ;;  %v1695_v15 = vpack.c.bf16 %v1031_v7, %v1027_v6 }
 0x112   : > { %976 = vmatmul.mubr.f32.vlgmr.msra.gmra.mrb[0].mxu1 %v418_v17  ;;  %1676 = vmatpush1.bf16.msra.mxu0 %v1675_v18  ;;  %v1697_v17 = vpack.c.bf16 %v1040_v12, %v1036_v11  ;;  %v1035_v18 = vld [vmem:[#allocation8 + $0x180] sm:$0xff] }
 0x113   : > { %1708 = vmatpush1.bf16.msra.mxu1 %v1707_v19  ;;  %1678 = vmatprep.subr.bf16.mxu0 %v1677_v20  ;;  %v1039_v19 = vld [vmem:[#allocation8 + $0x1a0] sm:$0xff]  ;;  %v1037_v20 = vld [vmem:[#allocation8 + $0x190] sm:$0xff] }
 0x114   : > { %1710 = vmatprep.subr.bf16.mxu1 %v1709_v24  ;;  %1137 = vmatprep.mubr.f32.mxu0 %v1987_v40  ;;  %v1048_v24 = vld [vmem:[#allocation8 + $0x1e8] sm:$0xff]  ;;  %v1699_v27 = vpack.c.bf16 %v1039_v19, %v1035_v18  ;;  %v1731_v28 = vpack.c.bf16 %v1041_v22, %v1037_v20 }
 0x115   : > { %1208 = vmatprep.mubr.f32.mxu1 %v1987_v40  ;;  %v1701_v29 = vpack.c.bf16 %v1048_v24, %v1044_v23 }
 0x116   : > { %1680 = vmatpush1.bf16.msra.mxu0 %v1679_v30  ;;  %v1043_v30 = vld [vmem:[#allocation8 + $0x1c0] sm:$0xff] }
 0x117   : > { %1712 = vmatpush1.bf16.msra.mxu1 %v1711_v31  ;;  %1682 = vmatprep.subr.bf16.mxu0 %v1681_v32  ;;  %v1047_v31 = vld [vmem:[#allocation8 + $0x1e0] sm:$0xff]  ;;  %v1733_v32 = vpack.c.bf16 %v1050_v26, %v1046_v25 }
 0x118   : > { %1714 = vmatprep.subr.bf16.mxu1 %v1713_v36  ;;  %v1703_v35 = vpack.c.bf16 %v1047_v31, %v1043_v30  ;;  %v1735_v36 = vpack.c.bf16 %v1049_v34, %v1045_v33 }
 0x11a   : > { %1684 = vmatpush1.bf16.msra.mxu0 %v1683_v43  ;;  %v679_v43 = vshrl.u32 %v678_v42, 7 }
 0x11b   : > { %1716 = vmatpush1.bf16.msra.mxu1 %v1715_v44  ;;  %1686 = vmatprep.subr.bf16.mxu0 %v1685_v45  ;;  %v676_v45 = vld [vmem:[%s2279_s3] sm:$0xf] }
 0x11c   : > { %1718 = vmatprep.subr.bf16.mxu1 %v1717_v49  ;;  %v680_v44 = vsub.s32 0, %v679_v43  ;;  %v688_v46 = vsub.s32 2, %v679_v43  ;;  %v684_v47 = vsub.s32 1, %v679_v43  ;;  %v692_v48 = vsub.s32 3, %v679_v43 }
 0x11e   : > { %1688 = vmatpush1.bf16.msra.mxu0 %v1687_v55  ;;  %v681_v49 = vrot.slane %v676_v45, %v680_v44  ;;  %v689_v50 = vrot.slane %v676_v45, %v688_v46  ;;  %v685_v51 = vrot.slane %v676_v45, %v684_v47  ;;  %v693_v53 = vrot.slane %v676_v45, %v692_v48 }
 0x11f   : > { %1720 = vmatpush1.bf16.msra.mxu1 %v1719_v56  ;;  %1690 = vmatprep.subr.bf16.mxu0 %v1689_v57  ;;  %v1056_v56 = vrot.slane %v1051_v52, %v680_v44  ;;  %v1245_v57 = vld [vmem:[%s2283_s7] sm:$0xf]  ;;  %v1064_v60 = vrot.slane %v1051_v52, %v688_v46  ;;  %v1224_v62 = vrot.slane %v1219_v54, %v680_v44 }
 0x120   : > { %1722 = vmatprep.subr.bf16.mxu1 %v1721_v61  ;;  %v1060_v61 = vrot.slane %v1051_v52, %v684_v47  ;;  %v1068_v0 = vrot.slane %v1051_v52, %v692_v48  ;;  %v1232_v1 = vrot.slane %v1219_v54, %v688_v46  ;;  %v1228_v2 = vrot.slane %v1219_v54, %v684_v47 }
 0x121   : > { %v1254_v11 = vrot.slane %v1245_v57, %v684_v47  ;;  %v1262_v20 = vrot.slane %v1245_v57, %v692_v48 }
 0x122   : > { %1692 = vmatpush1.bf16.msra.mxu0 %v1691_v3  ;;  %v1236_v3 = vrot.slane %v1219_v54, %v692_v48 }
 0x123   : > { %1724 = vmatpush1.bf16.msra.mxu1 %v1723_v4  ;;  %1694 = vmatprep.subr.bf16.mxu0 %v1693_v5  ;;  %v1250_v5 = vrot.slane %v1245_v57, %v680_v44 }
 0x124   : > { %1726 = vmatprep.subr.bf16.mxu1 %v1725_v9  ;;  %v1258_v9 = vrot.slane %v1245_v57, %v688_v46 }
 0x126   : > { %1696 = vmatpush1.bf16.msra.mxu0 %v1695_v15 }
 0x127   : > { %1728 = vmatpush1.bf16.msra.mxu1 %v1727_v16  ;;  %1698 = vmatprep.subr.bf16.mxu0 %v1697_v17 }
 0x128   : > { %1730 = vmatprep.subr.bf16.mxu1 %v1729_v21 }
 0x12a   : > { %1700 = vmatpush1.bf16.msra.mxu0 %v1699_v27 }
 0x12b   : > { %1732 = vmatpush1.bf16.msra.mxu1 %v1731_v28  ;;  %1702 = vmatprep.subr.bf16.mxu0 %v1701_v29 }
 0x12c   : > { %1734 = vmatprep.subr.bf16.mxu1 %v1733_v32 }
 0x12e   : > { %1704 = vmatpush1.bf16.msra.mxu0 %v1703_v35 }
 0x12f   : > { %1736 = vmatpush1.bf16.msra.mxu1 %v1735_v36 }
 0x131   : > { %1138 = vmatmul.mubr.f32.vlgmr.msra.gmra.mrb[2].mxu0 %v986_v37 }
 0x132   : > { %1209 = vmatmul.mubr.f32.vlgmr.msra.gmra.mrb[2].mxu1 %v986_v37 }
 0x1e4   : > { %v835_v38 = vpop.f32.mrb[0].mxu0 }
 0x1e5   : > { %v977_v39 = vpop.f32.mrb[0].mxu1  ;;  %v837_v40 = vpop.f32.mrb[1].mxu0  ;;  %v1737_v55 = vadd.f32 %v835_v38, %v681_v49 }
 0x1e6   : > { %v979_v41 = vpop.f32.mrb[1].mxu1  ;;  %v1739_v58 = vadd.f32 %v977_v39, %v689_v50  ;;  %v1738_v59 = vadd.f32 %v837_v40, %v685_v51  ;;  %v1281_v39 = vstv %s1280_s29 }
 0x1e7   : > { %v1740_v63 = vadd.f32 %v979_v41, %v693_v53  ;;  %v982_v6 = vmax.f32 %v1737_v55, 0.0 }
 0x1e8   : > { %v984_v12 = vmax.f32 %v1739_v58, 0.0  ;;  %v983_v13 = vmax.f32 %v1738_v59, 0.0 }
 0x1e9   : > { %v985_v17 = vmax.f32 %v1740_v63, 0.0  ;;  %v1241_v23 = vmul.f32 %v1224_v62, %v982_v6 }
 0x1ea   : > { %v1243_v26 = vmul.f32 %v1232_v1, %v984_v12  ;;  %v1242_v27 = vmul.f32 %v1228_v2, %v983_v13 }
 0x1eb   : > { %v1244_v30 = vmul.f32 %v1236_v3, %v985_v17 }
 0x204   : > { %v1139_v4 = vpop.f32.mrb[2].mxu0 }
 0x205   : > { %v1140_v7 = vadd.f32 %v1139_v4, %v1056_v56  ;;  %v1210_v8 = vpop.f32.mrb[2].mxu1  ;;  %v1141_v10 = vpop.f32.mrb[3].mxu0 }
 0x206   : > { %v1211_v14 = vadd.f32 %v1210_v8, %v1064_v60  ;;  %v1142_v15 = vadd.f32 %v1141_v10, %v1060_v61  ;;  %v1212_v16 = vpop.f32.mrb[3].mxu1 }
 0x207   : > { %v1215_v18 = vmax.f32 %v1140_v7, 0.0  ;;  %v1213_v19 = vadd.f32 %v1212_v16, %v1068_v0 }
 0x208   : > { %v1217_v21 = vmax.f32 %v1211_v14, 0.0  ;;  %v1216_v22 = vmax.f32 %v1142_v15, 0.0 }
 0x209   : > { %v1267_v24 = vmul.f32 %v1250_v5, %v1215_v18  ;;  %v1218_v25 = vmax.f32 %v1213_v19, 0.0 }
 0x20a   : > { %v1269_v28 = vmul.f32 %v1258_v9, %v1217_v21  ;;  %v1268_v29 = vmul.f32 %v1254_v11, %v1216_v22 }
 0x20b   : > { %v1271_v31 = vadd.f32 %v1267_v24, %v1241_v23  ;;  %v1270_v32 = vmul.f32 %v1262_v20, %v1218_v25 }
 0x20c   : > { %v1272_v33 = vadd.f32 %v1268_v29, %v1242_v27  ;;  %v1273_v34 = vadd.f32 %v1269_v28, %v1243_v26 }
 0x20d   : > { %v1274_v35 = vadd.f32 %v1270_v32, %v1244_v30 }
 0x20e   : > { %v1275_v36 = vadd.f32 %v1272_v33, %v1271_v31 }
 0x210   : > { %v1276_v37 = vadd.f32 %v1275_v36, %v1273_v34 }
 0x212   : > { %v1277_v38 = vadd.f32 %v1276_v37, %v1274_v35 }
 0x214   : > { %1278 = vadd.xlane.f32.xlu0 %v1277_v38 }
 0x2a1   : > { %v1279_v40 = vpop.xlane.xlu0 %1278 }
 0x2a2   : > { %v1282_v41 = vadd.f32 %v1281_v39, %v1279_v40 }
 0x2a4   : > { %v1283_v42 = vsub.f32 0.0, %v1282_v41 }
 0x2a6   : > { %v1284_v43 = vmul.f32 1.442695, %v1283_v42 }
 0x2a8   : > { %1813 = vpow2.f32 %v1284_v43 }
 0x2b2   : > { %v1814_v44 = vpop.eup %1813 }
 0x2b3   : > { %v1286_v45 = vadd.f32 1.0, %v1814_v44 }
 0x2b5   : > { %1815 = vrcp.f32 %v1286_v45 }
 0x2bf   : > { %v1816_v46 = vpop.eup %1815 }
 0x2c0   : > { %1290 = vst.msk [vmem:[%s415_s30] sm:$0xff] %vm1289_vm0, %v1816_v46 }
 0x2c1 PF: > { %s2301_s20 = smov %s2134_s11  ;;  %p24_p12 = scmp.ge.s32.totalorder %s2134_s11, 5  }
 0x2c2   : > { %s2302_s11 = smov %s1971_s12  ;;  %s2303_s12 = smov %s1975_s13 }
 0x2c3   : > { %s2304_s13 = smov %s2147_s22  ;;  %s2305_s14 = smov %s2301_s20 }
 0x2c4   :  { %26 = sbr.rel (!%p24_p12) target bundleno = 9 (0x9), region = 117 }
 0x2cb   :  { %1310 = vsyncpa [#allocation4], 1 }
 0x2cc   :  { %1312 = vsyncpa [#allocation4 + $0x1], 1 }
 0x2cd   :  { %1313 = vsyncpa [#allocation6], 1 }
 0x2ce   :  { %1315 = vsyncpa [#allocation6 + $0x1], 1 }
 0x2cf   :  { %1316 = vsyncpa [#allocation9], 1 }

</bundles_post_ra>
